<compile_context>
chip_gen: v7x
topology: tpu7x:2x2x1
jax: 0.10.0
libtpu: 0.0.40
codegen_flags: <defaults>
</compile_context>

<pallas_src>
import jax
import jax.numpy as jnp
from jax.experimental import pallas as pl
from jax.experimental.pallas import tpu as pltpu

POSITIVE_SLOPE = 0.1
NEGATIVE_SLOPE = 0.0
MINX = -0.01   # unused by the reference forward pass (kept for module parity)
MAXX = 0.4     # unused by the reference forward pass

_LANE = 128
_SMALL_INPUT_BYTES = 1 << 20   # below this, fused XLA elementwise wins


def _sublane_tile(itemsize):
    """Native packed sublane tile for the dtype width."""
    return {4: 8, 2: 16, 1: 32}.get(itemsize, 8)


def _target_block_bytes():
    """Per-generation block-size target (v5e stays at 2 MiB)."""
    try:
        kind = jax.devices()[0].device_kind.lower()
    except Exception:
        kind = ""
    if "v5 lite" in kind or "v5e" in kind or "v5litepod" in kind:
        return 2 << 20
    return 4 << 20


def _jnp_leaky_relu(x, positive_slope, negative_slope):
    """Plain-JAX reference/fallback path (small tensors, ragged tails)."""
    zero = jnp.zeros((), dtype=x.dtype)
    pos = jnp.asarray(positive_slope, dtype=x.dtype)
    if negative_slope == 0.0:
        return pos * jnp.maximum(x, zero)
    neg = jnp.asarray(negative_slope, dtype=x.dtype)
    return neg * jnp.minimum(x, zero) + pos * jnp.maximum(x, zero)


def _make_kernel(positive_slope, negative_slope):
    """Elementwise kernel specialized on the (static) slopes."""
    if negative_slope == 0.0:
        def kernel(x_ref, o_ref):
            x = x_ref[...]
            pos = jnp.asarray(positive_slope, dtype=x.dtype)
            o_ref[...] = (pos * jnp.maximum(x, 0)).astype(o_ref.dtype)
    else:
        def kernel(x_ref, o_ref):
            x = x_ref[...]
            pos = jnp.asarray(positive_slope, dtype=x.dtype)
            neg = jnp.asarray(negative_slope, dtype=x.dtype)
            o_ref[...] = (neg * jnp.minimum(x, 0)
                          + pos * jnp.maximum(x, 0)).astype(o_ref.dtype)
    return kernel


def _plan_2d(n_elem, itemsize):
    """Pick (R, C, block_rows, grid) for a lane-dense 2D view of the flat array.

    Returns None when n_elem is not a multiple of 128 (caller splits off an
    aligned prefix) or is too small to tile.
    """
    C = None
    for c in (4096, 2048, 1024, 512, 256, 128):
        if n_elem % c == 0:
            C = c
            break
    if C is None:
        return None
    R = n_elem // C
    sub = _sublane_tile(itemsize)
    if R < sub:
        return None

    target = _target_block_bytes()
    # Rows per block: multiple of the packed sublane tile, <= target bytes.
    max_rows = max(sub, (target // (C * itemsize)) // sub * sub)
    # Keep >= 2 grid steps whenever there is more than one block of work,
    # so both v7x TensorCores have something to stream.
    want_rows = pl.cdiv(pl.cdiv(R, 2), sub) * sub
    br = min(max_rows, max(sub, want_rows))
    grid = pl.cdiv(R, br)

    # Prefer an even number of grid steps (tail balance across 2 TCs).
    if grid > 1 and grid % 2 == 1:
        alt = pl.cdiv(pl.cdiv(R, grid + 1), sub) * sub
        if alt >= sub and pl.cdiv(R, alt) % 2 == 0:
            br = alt
            grid = pl.cdiv(R, alt)
    return R, C, br, grid


def _leaky_relu_2d(x2d, positive_slope, negative_slope, block_rows, grid,
                   donate_input=False):
    R, C = x2d.shape
    itemsize = jnp.dtype(x2d.dtype).itemsize
    extra = {}
    if donate_input:
        extra["input_output_aliases"] = {0: 0}
    return pl.pallas_call(
        _make_kernel(positive_slope, negative_slope),
        out_shape=jax.ShapeDtypeStruct((R, C), x2d.dtype),
        grid_spec=pltpu.PrefetchScalarGridSpec(
            num_scalar_prefetch=0,
            grid=(grid,),
            in_specs=[pl.BlockSpec((block_rows, C), lambda i: (i, 0))],
            out_specs=pl.BlockSpec((block_rows, C), lambda i: (i, 0)),
        ),
        compiler_params=pltpu.CompilerParams(
            dimension_semantics=("parallel",),
            vmem_limit_bytes=32 << 20),
        cost_estimate=pl.CostEstimate(
            flops=2 * R * C,
            transcendentals=0,
            bytes_accessed=2 * R * C * itemsize),
        **extra,
    )(x2d)


def custom_leaky_relu(x,
                      positive_slope=POSITIVE_SLOPE,
                      negative_slope=NEGATIVE_SLOPE,
                      minx=MINX,
                      maxx=MAXX,
                      donate_input=False):
    """Forward pass of CustomLeakyReLU. Works for any shape / float dtype."""
    # TODO(synk): the PyTorch forward never clamps to [minx, maxx]; they are
    # unused here to match the reference semantics exactly.
    del minx, maxx
    n_elem = x.size
    itemsize = jnp.dtype(x.dtype).itemsize

    # Tiny activations: pallas_call launch/pipeline warmup dominates; use
    # XLA-fused elementwise instead.
    if n_elem * itemsize < _SMALL_INPUT_BYTES:
        return _jnp_leaky_relu(x, positive_slope, negative_slope)

    orig_shape = x.shape
    x_flat = x.reshape(-1)

    plan = _plan_2d(n_elem, itemsize)
    if plan is not None:
        R, C, br, grid = plan
        out2d = _leaky_relu_2d(x_flat.reshape(R, C), positive_slope,
                               negative_slope, br, grid, donate_input)
        return out2d.reshape(orig_shape)

    # Ragged size (not a multiple of 128): run the aligned prefix through
    # Pallas, the tiny (< sub*128-element) tail through jnp.  No whole-tensor
    # pad/slice, so no extra full HBM pass.
    sub = _sublane_tile(itemsize)
    chunk = sub * _LANE
    main = (n_elem // chunk) * chunk
    head_plan = _plan_2d(main, itemsize)
    if head_plan is None:   # defensive; should not happen above the threshold
        return _jnp_leaky_relu(x, positive_slope, negative_slope)
    R, C, br, grid = head_plan
    head_out = _leaky_relu_2d(x_flat[:main].reshape(R, C), positive_slope,
                              negative_slope, br, grid, donate_input)
    tail_out = _jnp_leaky_relu(x_flat[main:], positive_slope, negative_slope)
    return jnp.concatenate([head_out.reshape(-1), tail_out]).reshape(orig_shape)


if __name__ == "__main__":
    key = jax.random.PRNGKey(0)
    k1, k2, k3 = jax.random.split(key, 3)

    def reference(x):
        zero = jnp.zeros_like(x)
        return (NEGATIVE_SLOPE * jnp.minimum(zero, x)
                + POSITIVE_SLOPE * jnp.maximum(zero, x))

    # 1) Small NCHW activation consistent with the module's conv-style use
    #    (takes the fused-jnp small-input fast path).
    x_small = jax.random.normal(k1, (2, 4, 16, 16), dtype=jnp.float32)
    out_small = jax.block_until_ready(custom_leaky_relu(x_small))
    assert out_small.shape == x_small.shape and out_small.dtype == x_small.dtype
    assert jnp.allclose(out_small, reference(x_small), atol=1e-6, rtol=1e-6)

    # 2) Moderate activation that exercises the Pallas streaming path
    #    (2 MiB, lane-dense 2D view, 2 parallel grid steps).
    x_big = jax.random.normal(k2, (4, 8, 128, 128), dtype=jnp.float32)
    out_big = jax.block_until_ready(custom_leaky_relu(x_big))
    assert out_big.shape == x_big.shape and out_big.dtype == x_big.dtype
    assert jnp.allclose(out_big, reference(x_big), atol=1e-6, rtol=1e-6)

    # 3) Ragged element count (not a multiple of 128): Pallas prefix + jnp tail.
    x_ragged = jax.random.normal(k3, (3, 511, 257), dtype=jnp.float32)
    out_ragged = jax.block_until_ready(custom_leaky_relu(x_ragged))
    assert out_ragged.shape == x_ragged.shape
    assert jnp.allclose(out_ragged, reference(x_ragged), atol=1e-6, rtol=1e-6)

    print("KERNEL_OK")
</pallas_src>

<mosaic_0001>
module attributes {stable_mosaic.version = 11 : i64} {
  func.func @kernel(%arg0: i32, %arg1: memref<64x4096xf32, #tpu.memory_space<vmem>>, %arg2: memref<64x4096xf32, #tpu.memory_space<vmem>>) attributes {dimension_semantics = [#tpu.dimension_semantics<parallel>], iteration_bounds = array<i64: 2>, scalar_prefetch = 0 : i64, scratch_operands = 0 : i64, tpu.core_type = #tpu.core_type<tc>, window_params = [{transform_indices = @transform_0, window_bounds = array<i64: 64, 4096>}, {transform_indices = @transform_1, window_bounds = array<i64: 64, 4096>}]} {
    %c0 = arith.constant 0 : index
    %c0_0 = arith.constant 0 : index
    %0 = vector.load %arg1[%c0, %c0_0] : memref<64x4096xf32, #tpu.memory_space<vmem>>, vector<64x4096xf32>
    %cst = arith.constant 0.000000e+00 : f32
    %1 = vector.broadcast %cst : f32 to vector<64x4096xf32>
    %2 = arith.maximumf %0, %1 : vector<64x4096xf32>
    %cst_1 = arith.constant 1.000000e-01 : f32
    %3 = vector.broadcast %cst_1 : f32 to vector<64x4096xf32>
    %4 = arith.mulf %3, %2 : vector<64x4096xf32>
    %c0_2 = arith.constant 0 : index
    %c0_3 = arith.constant 0 : index
    %5 = vector.load %arg2[%c0_2, %c0_3] : memref<64x4096xf32, #tpu.memory_space<vmem>>, vector<64x4096xf32>
    tpu.vector_store %arg2[%c0_2, %c0_3], %4 {strides = array<i32>} : memref<64x4096xf32, #tpu.memory_space<vmem>>, vector<64x4096xf32>,
    return
  }
  func.func @transform_0(%arg0: i32) -> (i32, i32) {
    %c0_i32 = arith.constant 0 : i32
    %c0_i32_0 = arith.constant 0 : i32
    return %arg0, %c0_i32 : i32, i32
  }
  func.func @transform_1(%arg0: i32) -> (i32, i32) {
    %c0_i32 = arith.constant 0 : i32
    %c0_i32_0 = arith.constant 0 : i32
    return %arg0, %c0_i32 : i32, i32
  }
}

</mosaic_0001>

<bundles_post_ra>
// kernel: tpu_custom_call.1
= control target key start
LH: loop header
LB: loop body
LE: loop exit
PB: predicated region body
PF: predicated region fallthrough
CT: control target
= control target key end

     0   :  { %6 = vsyncpa [#allocation3], 0  ;;  %s2113_s0 = inlined_call_operand.hbm [shape: f32[128,4096], index: 0, kind: input, shape index: {}]   ;;  %s2114_s1 = inlined_call_operand.hbm [shape: f32[128,4096], index: 1, kind: output, shape index: {}]  }
   0x1   :  { %8 = vsyncpa [#allocation3 + $0x1], 0 }
   0x2   :  { %9 = vsyncpa [#allocation4], 0 }
   0x3   :  { %11 = vsyncpa [#allocation4 + $0x1], 0  ;;  %s1434_s6 = smov 0   ;;  %s1436_s7 = smov 0  }
   0x4   :  { %s1438_s8 = smov 0   ;;  %s1440_s9 = smov 0  }
   0x5 LB: > { %s1455_s10 = sadd.s32 4294967295, %s1416_s9   ;;  %s1250_s11 = sadd.s32 4294967294, %s1416_s9   ;;  %s1416_s9 = sphi %s1440_s9, %s2127_s9   ;;  %s1412_s8 = sphi %s1438_s8, %s2126_s8   ;;  %s1408_s7 = sphi %s1436_s7, %s2125_s7   ;;  %s1404_s6 = sphi %s1434_s6, %s2124_s6  }
   0x6   : > { %s1459_s12 = sadd.s32 1, %s1416_s9   ;;  %s24_s13 = sadd.s32 1, %s1412_s8 }
   0x7   : > { %s21_s14 = ssub.s32 %s1416_s9, %s1459_s12  ;;  %p31_p0 = scmp.ne.s32.totalorder %s1412_s8, %s1408_s7 }
   0x8   : > { %p22_p1 = scmp.eq.s32.totalorder %s21_s14, 0  ;;  %p32_p2 = scmp.eq.s32.totalorder %s1416_s9, 0 }
   0x9   : > { %p37_p3 = scmp.ne.s32.totalorder %s1408_s7, %s1404_s6  ;;  %p38_p4 = scmp.eq.s32.totalorder %s1455_s10, 0 }
   0xa   : > { %s1471_s15 = scalar_select %p22_p1, %s1412_s8, %s24_s13  }
   0xb   : > { %p1473_p5 = por %p32_p2, %p31_p0  ;;  %p1477_p6 = por %p38_p4, %p37_p3 }
   0xc   : > { %p61_p7 = scmp.eq.s32.totalorder %s1455_s10, 1  ;;  %p67_p8 = scmp.eq.s32.totalorder %s1250_s11, 1 }
   0xd   : > { %p1282_p10 = scmp.lt.s32.totalorder %s1416_s9, 2  ;;  %s87_s20 = sand.u32 1, %s1412_s8  }
   0xe   : > { %p1484_p11 = por %p61_p7, %p31_p0  ;;  %p1488_p12 = por %p67_p8, %p37_p3 }
   0xf   : > { %s1267_s21 = sshll.u32 %s1416_s9, 15  ;;  %s1253_s22 = sshll.u32 %s87_s20, 11 }
  0x10   : > { %s2118_s18 = scalar_select %p1484_p11, 1, 0 }
  0x11   : > { %s2119_s19 = scalar_select %p1488_p12, 1, 0 }
  0x12   : > { %s1497_s25 = scalar_lea.hbm %s2113_s0, %s1267_s21  ;;  %s91_s26 = scalar_lea.vmem [#allocation2], %s1253_s22 }
  0x13   : > { %s99_s27 = sshll.u32 %s91_s26, 4  ;;  %p1501_p13 = pnand %p1282_p10, %p1473_p5  ;;  %s1505_s27 = int_to_ptr.vmem [resolvable:$true] %s99_s27 }
  0x14   : > { %s1507_s29 = scalar_lea.sflag [#allocation3], %s87_s20  ;;  %s1320_s30 = scalar_lea.hbm %s1497_s25, 32768 }
  0x15   : > { %p1321_p0 = scmp.ne.s32.totalorder %s1497_s25, %s1320_s30  ;;  %p1322_p1 = pneg %p1501_p13 }
  0x16   : > { %s1325_s4 = scalar_lea.hbm %s2113_s0, 65536  ;;  %p1326_p4 = scmp.lt.u32.totalorder %s1497_s25, %s2113_s0 }
  0x17   : > { %p1323_p2 = pnand %p1322_p1, %p1321_p0  ;;  %p1327_p5 = scmp.lt.u32.totalorder %s1325_s4, %s1320_s30 }
  0x18   : > { %p1329_p8 = scmp.lt.u32.totalorder %s1320_s30, %s1497_s25 }
  0x19   : > { %p1324_p3 = pneg %p1323_p2  ;;  %p1328_p7 = por %p1327_p5, %p1326_p4 }
  0x1b   : > { %p1330_p10 = por %p1329_p8, %p1328_p7 }
  0x1d   : > { %p1331_p9 = pnand %p1330_p10, %p1324_p3 }
  0x1f   : > { %1334 = shalt.err (!%p1331_p9)
}
  0x20   : > { %s1335_s13 = scalar_lea.vmem %s1505_s27, 32768  ;;  %s1418_s14 = smov [#allocation2]  }
  0x21   : > { %p1336_p0 = scmp.ne.s32.totalorder %s1505_s27, %s1335_s13  ;;  %s1340_s16 = sshll.u32 %s1418_s14, 4  ;;  %s1341_s16 = int_to_ptr.vmem [resolvable:$false] %s1340_s16 }
  0x22   : > { %s1342_s20 = scalar_lea.vmem %s1341_s16, 65536  ;;  %p1343_p11 = scmp.lt.s32.totalorder %s1505_s27, %s1341_s16 }
  0x23   : > { %p1338_p2 = pnand %p1336_p0, %p1322_p1  ;;  %p1344_p4 = scmp.lt.s32.totalorder %s1342_s20, %s1335_s13 }
  0x25   : > { %p1339_p12 = pneg %p1338_p2  ;;  %p1345_p5 = por %p1344_p4, %p1343_p11 }
  0x27   : > { %p1346_p7 = pnand %p1345_p5, %p1339_p12 }
  0x29   : > { %1349 = shalt.err (!%p1346_p7)
}
  0x2a   : > { %s1419_s21 = smov 4096   ;;  %s1420_s22 = smov 256  }
  0x2b   : > { %1277 = dma.hbm_to_vmem [thread:$0]  (!%p1501_p13), %s1497_s25, 32768, %s1505_s27, %s1507_s29, %s1419_s21, %s1419_s21, %s1420_s22  }
  0x2c   : > { %p1257_p9 = scmp.ge.s32.totalorder %s1416_s9, 1  ;;  %p107_p1 = scmp.lt.s32.totalorder %s1416_s9, 3 }
  0x2e   : > { %p108_p3 = pnand %p1257_p9, %p107_p1 }
  0x2f   : > { %s1538_s23 = sand.u32 (!%p108_p3), 1, %s1408_s7  }
  0x30   : > { %111 = sbr.rel (%p108_p3) target bundleno = 290 (0x122), region = 24  ;;  %s1258_s24 = sshll.u32 (!%p108_p3), %s1538_s23, 11 }
  0x31   : > { %s114_s26 = scalar_lea.sflag (!%p108_p3), [#allocation3], %s1538_s23  ;;  %s1542_s30 = scalar_lea.vmem (!%p108_p3), [#allocation2], %s1258_s24 }
  0x37   : > { %1395 = dma.done.wait (%p1477_p6), %s114_s26, 32768  }
  0x38   : > { %1397 = vsyncadd (%p1477_p6), %s114_s26, 4294934528  ;;  %v138_v0 = vld [vmem:[%s1542_s30] sm:$0xff]  ;;  %v139_v1 = vld [vmem:[%s1542_s30 + $0x8] sm:$0xff]  ;;  %s1557_s17 = scalar_lea.vmem [#allocation5], %s1258_s24  ;;  %s1269_s25 = sshll.u32 %s1455_s10, 15 }
  0x39   : > { %v140_v2 = vld [vmem:[%s1542_s30 + $0x10] sm:$0xff]  ;;  %v394_v3 = vmax.f32 %v138_v0, 0.0  ;;  %v395_v4 = vmax.f32 %v139_v1, 0.0  ;;  %v141_v6 = vld [vmem:[%s1542_s30 + $0x18] sm:$0xff]  ;;  %v142_v7 = vld [vmem:[%s1542_s30 + $0x20] sm:$0xff]  ;;  %s1177_s27 = sshll.u32 %s1557_s17, 4  ;;  %s2063_s2 = scalar_lea.hbm %s2114_s1, %s1269_s25  ;;  %s2065_s27 = int_to_ptr.vmem [resolvable:$true] %s1177_s27 }
  0x3a   : > { %v396_v5 = vmax.f32 %v140_v2, 0.0  ;;  %v143_v8 = vld [vmem:[%s1542_s30 + $0x28] sm:$0xff]  ;;  %v397_v9 = vmax.f32 %v141_v6, 0.0  ;;  %v398_v10 = vmax.f32 %v142_v7, 0.0  ;;  %v144_v12 = vld [vmem:[%s1542_s30 + $0x30] sm:$0xff]  ;;  %v145_v13 = vld [vmem:[%s1542_s30 + $0x38] sm:$0xff] }
  0x3b   : > { %v399_v11 = vmax.f32 %v143_v8, 0.0  ;;  %v146_v14 = vld [vmem:[%s1542_s30 + $0x40] sm:$0xff]  ;;  %v650_v15 = vmul.f32 0.1, %v394_v3  ;;  %v651_v16 = vmul.f32 0.1, %v395_v4 }
  0x3c   : > { %v652_v17 = vmul.f32 0.1, %v396_v5  ;;  %v653_v18 = vmul.f32 0.1, %v397_v9  ;;  %v654_v19 = vmul.f32 0.1, %v398_v10 }
  0x3d   : > { %v655_v20 = vmul.f32 0.1, %v399_v11  ;;  %906 = vst [vmem:[%s1557_s17] sm:$0xff] %v650_v15  ;;  %907 = vst [vmem:[%s1557_s17 + $0x8] sm:$0xff] %v651_v16  ;;  %v400_v21 = vmax.f32 %v144_v12, 0.0  ;;  %v401_v22 = vmax.f32 %v145_v13, 0.0  ;;  %v402_v23 = vmax.f32 %v146_v14, 0.0 }
  0x3e   : > { %908 = vst [vmem:[%s1557_s17 + $0x10] sm:$0xff] %v652_v17  ;;  %v147_v24 = vld [vmem:[%s1542_s30 + $0x48] sm:$0xff]  ;;  %v148_v25 = vld [vmem:[%s1542_s30 + $0x50] sm:$0xff]  ;;  %v149_v26 = vld [vmem:[%s1542_s30 + $0x58] sm:$0xff]  ;;  %s1163_s10 = scalar_lea.sflag [#allocation4], %s1538_s23  ;;  %s1350_s3 = scalar_lea.vmem %s2065_s27, 32768 }
  0x3f   : > { %909 = vst [vmem:[%s1557_s17 + $0x18] sm:$0xff] %v653_v18  ;;  %910 = vst [vmem:[%s1557_s17 + $0x20] sm:$0xff] %v654_v19  ;;  %v403_v27 = vmax.f32 %v147_v24, 0.0  ;;  %v404_v28 = vmax.f32 %v148_v25, 0.0  ;;  %v405_v29 = vmax.f32 %v149_v26, 0.0  ;;  %v150_v30 = vld [vmem:[%s1542_s30 + $0x60] sm:$0xff]  ;;  %p1351_p6 = scmp.ne.s32.totalorder %s2065_s27, %s1350_s3 }
  0x40   : > { %911 = vst [vmem:[%s1557_s17 + $0x28] sm:$0xff] %v655_v20  ;;  %v151_v31 = vld [vmem:[%s1542_s30 + $0x68] sm:$0xff]  ;;  %v152_v32 = vld [vmem:[%s1542_s30 + $0x70] sm:$0xff]  ;;  %v656_v33 = vmul.f32 0.1, %v400_v21  ;;  %v406_v39 = vmax.f32 %v150_v30, 0.0 }
  0x41   : > { %v657_v34 = vmul.f32 0.1, %v401_v22  ;;  %v658_v35 = vmul.f32 0.1, %v402_v23  ;;  %v659_v36 = vmul.f32 0.1, %v403_v27 }
  0x42   : > { %v660_v37 = vmul.f32 0.1, %v404_v28  ;;  %v661_v38 = vmul.f32 0.1, %v405_v29  ;;  %912 = vst [vmem:[%s1557_s17 + $0x30] sm:$0xff] %v656_v33  ;;  %v407_v40 = vmax.f32 %v151_v31, 0.0 }
  0x43   : > { %913 = vst [vmem:[%s1557_s17 + $0x38] sm:$0xff] %v657_v34  ;;  %914 = vst [vmem:[%s1557_s17 + $0x40] sm:$0xff] %v658_v35  ;;  %v408_v41 = vmax.f32 %v152_v32, 0.0  ;;  %v153_v42 = vld [vmem:[%s1542_s30 + $0x78] sm:$0xff]  ;;  %v154_v43 = vld [vmem:[%s1542_s30 + $0x80] sm:$0xff]  ;;  %p2121_p11 = scmp.ne.s32.totalorder %s2118_s18, 0 }
  0x44   : > { %v155_v44 = vld [vmem:[%s1542_s30 + $0x88] sm:$0xff]  ;;  %915 = vst [vmem:[%s1557_s17 + $0x48] sm:$0xff] %v659_v36  ;;  %916 = vst [vmem:[%s1557_s17 + $0x50] sm:$0xff] %v660_v37  ;;  %v409_v45 = vmax.f32 %v153_v42, 0.0  ;;  %v410_v46 = vmax.f32 %v154_v43, 0.0  ;;  %v156_v48 = vld [vmem:[%s1542_s30 + $0x90] sm:$0xff] }
  0x45   : > { %917 = vst [vmem:[%s1557_s17 + $0x58] sm:$0xff] %v661_v38  ;;  %v411_v47 = vmax.f32 %v155_v44, 0.0  ;;  %v157_v49 = vld [vmem:[%s1542_s30 + $0x98] sm:$0xff]  ;;  %v158_v50 = vld [vmem:[%s1542_s30 + $0xa0] sm:$0xff]  ;;  %v662_v51 = vmul.f32 0.1, %v406_v39  ;;  %p1352_p12 = pnand %p1351_p6, %p2121_p11 }
  0x46   : > { %v663_v52 = vmul.f32 0.1, %v407_v40  ;;  %v664_v53 = vmul.f32 0.1, %v408_v41  ;;  %v665_v54 = vmul.f32 0.1, %v409_v45 }
  0x47   : > { %v666_v55 = vmul.f32 0.1, %v410_v46  ;;  %v667_v56 = vmul.f32 0.1, %v411_v47  ;;  %918 = vst [vmem:[%s1557_s17 + $0x60] sm:$0xff] %v662_v51  ;;  %v412_v57 = vmax.f32 %v156_v48, 0.0  ;;  %p1353_p13 = pneg %p1352_p12 }
  0x48   : > { %919 = vst [vmem:[%s1557_s17 + $0x68] sm:$0xff] %v663_v52  ;;  %920 = vst [vmem:[%s1557_s17 + $0x70] sm:$0xff] %v664_v53  ;;  %v413_v58 = vmax.f32 %v157_v49, 0.0  ;;  %v414_v59 = vmax.f32 %v158_v50, 0.0  ;;  %v159_v60 = vld [vmem:[%s1542_s30 + $0xa8] sm:$0xff]  ;;  %v160_v61 = vld [vmem:[%s1542_s30 + $0xb0] sm:$0xff] }
  0x49   : > { %v161_v62 = vld [vmem:[%s1542_s30 + $0xb8] sm:$0xff]  ;;  %921 = vst [vmem:[%s1557_s17 + $0x78] sm:$0xff] %v665_v54  ;;  %922 = vst [vmem:[%s1557_s17 + $0x80] sm:$0xff] %v666_v55  ;;  %v415_v63 = vmax.f32 %v159_v60, 0.0  ;;  %v416_v0 = vmax.f32 %v160_v61, 0.0  ;;  %v162_v2 = vld [vmem:[%s1542_s30 + $0xc0] sm:$0xff] }
  0x4a   : > { %923 = vst [vmem:[%s1557_s17 + $0x88] sm:$0xff] %v667_v56  ;;  %v417_v1 = vmax.f32 %v161_v62, 0.0  ;;  %v163_v3 = vld [vmem:[%s1542_s30 + $0xc8] sm:$0xff]  ;;  %v164_v4 = vld [vmem:[%s1542_s30 + $0xd0] sm:$0xff]  ;;  %v668_v5 = vmul.f32 0.1, %v412_v57 }
  0x4b   : > { %v669_v6 = vmul.f32 0.1, %v413_v58  ;;  %v670_v7 = vmul.f32 0.1, %v414_v59  ;;  %v671_v8 = vmul.f32 0.1, %v415_v63 }
  0x4c   : > { %v672_v9 = vmul.f32 0.1, %v416_v0  ;;  %v673_v10 = vmul.f32 0.1, %v417_v1  ;;  %924 = vst [vmem:[%s1557_s17 + $0x90] sm:$0xff] %v668_v5  ;;  %v418_v11 = vmax.f32 %v162_v2, 0.0 }
  0x4d   : > { %925 = vst [vmem:[%s1557_s17 + $0x98] sm:$0xff] %v669_v6  ;;  %926 = vst [vmem:[%s1557_s17 + $0xa0] sm:$0xff] %v670_v7  ;;  %v419_v12 = vmax.f32 %v163_v3, 0.0  ;;  %v420_v13 = vmax.f32 %v164_v4, 0.0  ;;  %v165_v14 = vld [vmem:[%s1542_s30 + $0xd8] sm:$0xff]  ;;  %v166_v15 = vld [vmem:[%s1542_s30 + $0xe0] sm:$0xff] }
  0x4e   : > { %v167_v16 = vld [vmem:[%s1542_s30 + $0xe8] sm:$0xff]  ;;  %927 = vst [vmem:[%s1557_s17 + $0xa8] sm:$0xff] %v671_v8  ;;  %928 = vst [vmem:[%s1557_s17 + $0xb0] sm:$0xff] %v672_v9  ;;  %v421_v17 = vmax.f32 %v165_v14, 0.0  ;;  %v422_v18 = vmax.f32 %v166_v15, 0.0  ;;  %v168_v20 = vld [vmem:[%s1542_s30 + $0xf0] sm:$0xff] }
  0x4f   : > { %929 = vst [vmem:[%s1557_s17 + $0xb8] sm:$0xff] %v673_v10  ;;  %v423_v19 = vmax.f32 %v167_v16, 0.0  ;;  %v169_v21 = vld [vmem:[%s1542_s30 + $0xf8] sm:$0xff]  ;;  %v170_v22 = vld [vmem:[%s1542_s30 + $0x100] sm:$0xff]  ;;  %v674_v23 = vmul.f32 0.1, %v418_v11 }
  0x50   : > { %v675_v24 = vmul.f32 0.1, %v419_v12  ;;  %v676_v25 = vmul.f32 0.1, %v420_v13  ;;  %v677_v26 = vmul.f32 0.1, %v421_v17 }
  0x51   : > { %v678_v27 = vmul.f32 0.1, %v422_v18  ;;  %v679_v28 = vmul.f32 0.1, %v423_v19  ;;  %930 = vst [vmem:[%s1557_s17 + $0xc0] sm:$0xff] %v674_v23  ;;  %v424_v29 = vmax.f32 %v168_v20, 0.0 }
  0x52   : > { %931 = vst [vmem:[%s1557_s17 + $0xc8] sm:$0xff] %v675_v24  ;;  %932 = vst [vmem:[%s1557_s17 + $0xd0] sm:$0xff] %v676_v25  ;;  %v425_v30 = vmax.f32 %v169_v21, 0.0  ;;  %v426_v31 = vmax.f32 %v170_v22, 0.0  ;;  %v171_v32 = vld [vmem:[%s1542_s30 + $0x108] sm:$0xff]  ;;  %v172_v33 = vld [vmem:[%s1542_s30 + $0x110] sm:$0xff] }
  0x53   : > { %v173_v34 = vld [vmem:[%s1542_s30 + $0x118] sm:$0xff]  ;;  %933 = vst [vmem:[%s1557_s17 + $0xd8] sm:$0xff] %v677_v26  ;;  %934 = vst [vmem:[%s1557_s17 + $0xe0] sm:$0xff] %v678_v27  ;;  %v427_v35 = vmax.f32 %v171_v32, 0.0  ;;  %v428_v36 = vmax.f32 %v172_v33, 0.0  ;;  %v174_v38 = vld [vmem:[%s1542_s30 + $0x120] sm:$0xff] }
  0x54   : > { %935 = vst [vmem:[%s1557_s17 + $0xe8] sm:$0xff] %v679_v28  ;;  %v429_v37 = vmax.f32 %v173_v34, 0.0  ;;  %v175_v39 = vld [vmem:[%s1542_s30 + $0x128] sm:$0xff]  ;;  %v176_v40 = vld [vmem:[%s1542_s30 + $0x130] sm:$0xff]  ;;  %v680_v41 = vmul.f32 0.1, %v424_v29 }
  0x55   : > { %v681_v42 = vmul.f32 0.1, %v425_v30  ;;  %v682_v43 = vmul.f32 0.1, %v426_v31  ;;  %v683_v44 = vmul.f32 0.1, %v427_v35 }
  0x56   : > { %v684_v45 = vmul.f32 0.1, %v428_v36  ;;  %v685_v46 = vmul.f32 0.1, %v429_v37  ;;  %936 = vst [vmem:[%s1557_s17 + $0xf0] sm:$0xff] %v680_v41  ;;  %v430_v47 = vmax.f32 %v174_v38, 0.0 }
  0x57   : > { %937 = vst [vmem:[%s1557_s17 + $0xf8] sm:$0xff] %v681_v42  ;;  %938 = vst [vmem:[%s1557_s17 + $0x100] sm:$0xff] %v682_v43  ;;  %v431_v48 = vmax.f32 %v175_v39, 0.0  ;;  %v432_v49 = vmax.f32 %v176_v40, 0.0  ;;  %v177_v50 = vld [vmem:[%s1542_s30 + $0x138] sm:$0xff]  ;;  %v178_v51 = vld [vmem:[%s1542_s30 + $0x140] sm:$0xff] }
  0x58   : > { %v179_v52 = vld [vmem:[%s1542_s30 + $0x148] sm:$0xff]  ;;  %939 = vst [vmem:[%s1557_s17 + $0x108] sm:$0xff] %v683_v44  ;;  %940 = vst [vmem:[%s1557_s17 + $0x110] sm:$0xff] %v684_v45  ;;  %v433_v53 = vmax.f32 %v177_v50, 0.0  ;;  %v434_v54 = vmax.f32 %v178_v51, 0.0  ;;  %v180_v56 = vld [vmem:[%s1542_s30 + $0x150] sm:$0xff] }
  0x59   : > { %941 = vst [vmem:[%s1557_s17 + $0x118] sm:$0xff] %v685_v46  ;;  %v435_v55 = vmax.f32 %v179_v52, 0.0  ;;  %v181_v57 = vld [vmem:[%s1542_s30 + $0x158] sm:$0xff]  ;;  %v182_v58 = vld [vmem:[%s1542_s30 + $0x160] sm:$0xff]  ;;  %v686_v59 = vmul.f32 0.1, %v430_v47 }
  0x5a   : > { %v687_v60 = vmul.f32 0.1, %v431_v48  ;;  %v688_v61 = vmul.f32 0.1, %v432_v49  ;;  %v689_v62 = vmul.f32 0.1, %v433_v53 }
  0x5b   : > { %v690_v63 = vmul.f32 0.1, %v434_v54  ;;  %v691_v0 = vmul.f32 0.1, %v435_v55  ;;  %942 = vst [vmem:[%s1557_s17 + $0x120] sm:$0xff] %v686_v59  ;;  %v436_v1 = vmax.f32 %v180_v56, 0.0 }
  0x5c   : > { %943 = vst [vmem:[%s1557_s17 + $0x128] sm:$0xff] %v687_v60  ;;  %944 = vst [vmem:[%s1557_s17 + $0x130] sm:$0xff] %v688_v61  ;;  %v437_v2 = vmax.f32 %v181_v57, 0.0  ;;  %v438_v3 = vmax.f32 %v182_v58, 0.0  ;;  %v183_v4 = vld [vmem:[%s1542_s30 + $0x168] sm:$0xff]  ;;  %v184_v5 = vld [vmem:[%s1542_s30 + $0x170] sm:$0xff] }
  0x5d   : > { %v185_v6 = vld [vmem:[%s1542_s30 + $0x178] sm:$0xff]  ;;  %945 = vst [vmem:[%s1557_s17 + $0x138] sm:$0xff] %v689_v62  ;;  %946 = vst [vmem:[%s1557_s17 + $0x140] sm:$0xff] %v690_v63  ;;  %v439_v7 = vmax.f32 %v183_v4, 0.0  ;;  %v440_v8 = vmax.f32 %v184_v5, 0.0  ;;  %v186_v10 = vld [vmem:[%s1542_s30 + $0x180] sm:$0xff] }
  0x5e   : > { %947 = vst [vmem:[%s1557_s17 + $0x148] sm:$0xff] %v691_v0  ;;  %v441_v9 = vmax.f32 %v185_v6, 0.0  ;;  %v187_v11 = vld [vmem:[%s1542_s30 + $0x188] sm:$0xff]  ;;  %v188_v12 = vld [vmem:[%s1542_s30 + $0x190] sm:$0xff]  ;;  %v692_v13 = vmul.f32 0.1, %v436_v1 }
  0x5f   : > { %v693_v14 = vmul.f32 0.1, %v437_v2  ;;  %v694_v15 = vmul.f32 0.1, %v438_v3  ;;  %v695_v16 = vmul.f32 0.1, %v439_v7 }
  0x60   : > { %v696_v17 = vmul.f32 0.1, %v440_v8  ;;  %v697_v18 = vmul.f32 0.1, %v441_v9  ;;  %948 = vst [vmem:[%s1557_s17 + $0x150] sm:$0xff] %v692_v13  ;;  %v442_v19 = vmax.f32 %v186_v10, 0.0 }
  0x61   : > { %949 = vst [vmem:[%s1557_s17 + $0x158] sm:$0xff] %v693_v14  ;;  %950 = vst [vmem:[%s1557_s17 + $0x160] sm:$0xff] %v694_v15  ;;  %v443_v20 = vmax.f32 %v187_v11, 0.0  ;;  %v444_v21 = vmax.f32 %v188_v12, 0.0  ;;  %v189_v22 = vld [vmem:[%s1542_s30 + $0x198] sm:$0xff]  ;;  %v190_v23 = vld [vmem:[%s1542_s30 + $0x1a0] sm:$0xff] }
  0x62   : > { %v191_v24 = vld [vmem:[%s1542_s30 + $0x1a8] sm:$0xff]  ;;  %951 = vst [vmem:[%s1557_s17 + $0x168] sm:$0xff] %v695_v16  ;;  %952 = vst [vmem:[%s1557_s17 + $0x170] sm:$0xff] %v696_v17  ;;  %v445_v25 = vmax.f32 %v189_v22, 0.0  ;;  %v446_v26 = vmax.f32 %v190_v23, 0.0  ;;  %v192_v28 = vld [vmem:[%s1542_s30 + $0x1b0] sm:$0xff] }
  0x63   : > { %953 = vst [vmem:[%s1557_s17 + $0x178] sm:$0xff] %v697_v18  ;;  %v447_v27 = vmax.f32 %v191_v24, 0.0  ;;  %v193_v29 = vld [vmem:[%s1542_s30 + $0x1b8] sm:$0xff]  ;;  %v194_v30 = vld [vmem:[%s1542_s30 + $0x1c0] sm:$0xff]  ;;  %v698_v31 = vmul.f32 0.1, %v442_v19 }
  0x64   : > { %v699_v32 = vmul.f32 0.1, %v443_v20  ;;  %v700_v33 = vmul.f32 0.1, %v444_v21  ;;  %v701_v34 = vmul.f32 0.1, %v445_v25 }
  0x65   : > { %v702_v35 = vmul.f32 0.1, %v446_v26  ;;  %v703_v36 = vmul.f32 0.1, %v447_v27  ;;  %954 = vst [vmem:[%s1557_s17 + $0x180] sm:$0xff] %v698_v31  ;;  %v448_v37 = vmax.f32 %v192_v28, 0.0 }
  0x66   : > { %955 = vst [vmem:[%s1557_s17 + $0x188] sm:$0xff] %v699_v32  ;;  %956 = vst [vmem:[%s1557_s17 + $0x190] sm:$0xff] %v700_v33  ;;  %v449_v38 = vmax.f32 %v193_v29, 0.0  ;;  %v450_v39 = vmax.f32 %v194_v30, 0.0  ;;  %v195_v40 = vld [vmem:[%s1542_s30 + $0x1c8] sm:$0xff]  ;;  %v196_v41 = vld [vmem:[%s1542_s30 + $0x1d0] sm:$0xff] }
  0x67   : > { %v197_v42 = vld [vmem:[%s1542_s30 + $0x1d8] sm:$0xff]  ;;  %957 = vst [vmem:[%s1557_s17 + $0x198] sm:$0xff] %v701_v34  ;;  %958 = vst [vmem:[%s1557_s17 + $0x1a0] sm:$0xff] %v702_v35  ;;  %v451_v43 = vmax.f32 %v195_v40, 0.0  ;;  %v452_v44 = vmax.f32 %v196_v41, 0.0  ;;  %v198_v46 = vld [vmem:[%s1542_s30 + $0x1e0] sm:$0xff] }
  0x68   : > { %959 = vst [vmem:[%s1557_s17 + $0x1a8] sm:$0xff] %v703_v36  ;;  %v453_v45 = vmax.f32 %v197_v42, 0.0  ;;  %v199_v47 = vld [vmem:[%s1542_s30 + $0x1e8] sm:$0xff]  ;;  %v200_v48 = vld [vmem:[%s1542_s30 + $0x1f0] sm:$0xff]  ;;  %v704_v49 = vmul.f32 0.1, %v448_v37 }
  0x69   : > { %v705_v50 = vmul.f32 0.1, %v449_v38  ;;  %v706_v51 = vmul.f32 0.1, %v450_v39  ;;  %v707_v52 = vmul.f32 0.1, %v451_v43 }
  0x6a   : > { %v708_v53 = vmul.f32 0.1, %v452_v44  ;;  %v709_v54 = vmul.f32 0.1, %v453_v45  ;;  %960 = vst [vmem:[%s1557_s17 + $0x1b0] sm:$0xff] %v704_v49  ;;  %v454_v55 = vmax.f32 %v198_v46, 0.0 }
  0x6b   : > { %961 = vst [vmem:[%s1557_s17 + $0x1b8] sm:$0xff] %v705_v50  ;;  %962 = vst [vmem:[%s1557_s17 + $0x1c0] sm:$0xff] %v706_v51  ;;  %v455_v56 = vmax.f32 %v199_v47, 0.0  ;;  %v456_v57 = vmax.f32 %v200_v48, 0.0  ;;  %v201_v58 = vld [vmem:[%s1542_s30 + $0x1f8] sm:$0xff]  ;;  %v202_v59 = vld [vmem:[%s1542_s30 + $0x200] sm:$0xff] }
  0x6c   : > { %v203_v60 = vld [vmem:[%s1542_s30 + $0x208] sm:$0xff]  ;;  %963 = vst [vmem:[%s1557_s17 + $0x1c8] sm:$0xff] %v707_v52  ;;  %964 = vst [vmem:[%s1557_s17 + $0x1d0] sm:$0xff] %v708_v53  ;;  %v457_v61 = vmax.f32 %v201_v58, 0.0  ;;  %v458_v62 = vmax.f32 %v202_v59, 0.0  ;;  %v204_v0 = vld [vmem:[%s1542_s30 + $0x210] sm:$0xff] }
  0x6d   : > { %965 = vst [vmem:[%s1557_s17 + $0x1d8] sm:$0xff] %v709_v54  ;;  %v459_v63 = vmax.f32 %v203_v60, 0.0  ;;  %v205_v1 = vld [vmem:[%s1542_s30 + $0x218] sm:$0xff]  ;;  %v206_v2 = vld [vmem:[%s1542_s30 + $0x220] sm:$0xff]  ;;  %v710_v3 = vmul.f32 0.1, %v454_v55 }
  0x6e   : > { %v711_v4 = vmul.f32 0.1, %v455_v56  ;;  %v712_v5 = vmul.f32 0.1, %v456_v57  ;;  %v713_v6 = vmul.f32 0.1, %v457_v61 }
  0x6f   : > { %v714_v7 = vmul.f32 0.1, %v458_v62  ;;  %v715_v8 = vmul.f32 0.1, %v459_v63  ;;  %966 = vst [vmem:[%s1557_s17 + $0x1e0] sm:$0xff] %v710_v3  ;;  %v460_v9 = vmax.f32 %v204_v0, 0.0 }
  0x70   : > { %967 = vst [vmem:[%s1557_s17 + $0x1e8] sm:$0xff] %v711_v4  ;;  %968 = vst [vmem:[%s1557_s17 + $0x1f0] sm:$0xff] %v712_v5  ;;  %v461_v10 = vmax.f32 %v205_v1, 0.0  ;;  %v462_v11 = vmax.f32 %v206_v2, 0.0  ;;  %v207_v12 = vld [vmem:[%s1542_s30 + $0x228] sm:$0xff]  ;;  %v208_v13 = vld [vmem:[%s1542_s30 + $0x230] sm:$0xff] }
  0x71   : > { %v209_v14 = vld [vmem:[%s1542_s30 + $0x238] sm:$0xff]  ;;  %969 = vst [vmem:[%s1557_s17 + $0x1f8] sm:$0xff] %v713_v6  ;;  %970 = vst [vmem:[%s1557_s17 + $0x200] sm:$0xff] %v714_v7  ;;  %v463_v15 = vmax.f32 %v207_v12, 0.0  ;;  %v464_v16 = vmax.f32 %v208_v13, 0.0  ;;  %v210_v18 = vld [vmem:[%s1542_s30 + $0x240] sm:$0xff] }
  0x72   : > { %971 = vst [vmem:[%s1557_s17 + $0x208] sm:$0xff] %v715_v8  ;;  %v465_v17 = vmax.f32 %v209_v14, 0.0  ;;  %v211_v19 = vld [vmem:[%s1542_s30 + $0x248] sm:$0xff]  ;;  %v212_v20 = vld [vmem:[%s1542_s30 + $0x250] sm:$0xff]  ;;  %v716_v21 = vmul.f32 0.1, %v460_v9 }
  0x73   : > { %v717_v22 = vmul.f32 0.1, %v461_v10  ;;  %v718_v23 = vmul.f32 0.1, %v462_v11  ;;  %v719_v24 = vmul.f32 0.1, %v463_v15 }
  0x74   : > { %v720_v25 = vmul.f32 0.1, %v464_v16  ;;  %v721_v26 = vmul.f32 0.1, %v465_v17  ;;  %972 = vst [vmem:[%s1557_s17 + $0x210] sm:$0xff] %v716_v21  ;;  %v466_v27 = vmax.f32 %v210_v18, 0.0 }
  0x75   : > { %973 = vst [vmem:[%s1557_s17 + $0x218] sm:$0xff] %v717_v22  ;;  %974 = vst [vmem:[%s1557_s17 + $0x220] sm:$0xff] %v718_v23  ;;  %v467_v28 = vmax.f32 %v211_v19, 0.0  ;;  %v468_v29 = vmax.f32 %v212_v20, 0.0  ;;  %v213_v30 = vld [vmem:[%s1542_s30 + $0x258] sm:$0xff]  ;;  %v214_v31 = vld [vmem:[%s1542_s30 + $0x260] sm:$0xff] }
  0x76   : > { %v215_v32 = vld [vmem:[%s1542_s30 + $0x268] sm:$0xff]  ;;  %975 = vst [vmem:[%s1557_s17 + $0x228] sm:$0xff] %v719_v24  ;;  %976 = vst [vmem:[%s1557_s17 + $0x230] sm:$0xff] %v720_v25  ;;  %v469_v33 = vmax.f32 %v213_v30, 0.0  ;;  %v470_v34 = vmax.f32 %v214_v31, 0.0  ;;  %v216_v36 = vld [vmem:[%s1542_s30 + $0x270] sm:$0xff] }
  0x77   : > { %977 = vst [vmem:[%s1557_s17 + $0x238] sm:$0xff] %v721_v26  ;;  %v471_v35 = vmax.f32 %v215_v32, 0.0  ;;  %v217_v37 = vld [vmem:[%s1542_s30 + $0x278] sm:$0xff]  ;;  %v218_v38 = vld [vmem:[%s1542_s30 + $0x280] sm:$0xff]  ;;  %v722_v39 = vmul.f32 0.1, %v466_v27 }
  0x78   : > { %v723_v40 = vmul.f32 0.1, %v467_v28  ;;  %v724_v41 = vmul.f32 0.1, %v468_v29  ;;  %v725_v42 = vmul.f32 0.1, %v469_v33 }
  0x79   : > { %v726_v43 = vmul.f32 0.1, %v470_v34  ;;  %v727_v44 = vmul.f32 0.1, %v471_v35  ;;  %978 = vst [vmem:[%s1557_s17 + $0x240] sm:$0xff] %v722_v39  ;;  %v472_v45 = vmax.f32 %v216_v36, 0.0 }
  0x7a   : > { %979 = vst [vmem:[%s1557_s17 + $0x248] sm:$0xff] %v723_v40  ;;  %980 = vst [vmem:[%s1557_s17 + $0x250] sm:$0xff] %v724_v41  ;;  %v473_v46 = vmax.f32 %v217_v37, 0.0  ;;  %v474_v47 = vmax.f32 %v218_v38, 0.0  ;;  %v219_v48 = vld [vmem:[%s1542_s30 + $0x288] sm:$0xff]  ;;  %v220_v49 = vld [vmem:[%s1542_s30 + $0x290] sm:$0xff] }
  0x7b   : > { %v221_v50 = vld [vmem:[%s1542_s30 + $0x298] sm:$0xff]  ;;  %981 = vst [vmem:[%s1557_s17 + $0x258] sm:$0xff] %v725_v42  ;;  %982 = vst [vmem:[%s1557_s17 + $0x260] sm:$0xff] %v726_v43  ;;  %v475_v51 = vmax.f32 %v219_v48, 0.0  ;;  %v476_v52 = vmax.f32 %v220_v49, 0.0  ;;  %v222_v54 = vld [vmem:[%s1542_s30 + $0x2a0] sm:$0xff] }
  0x7c   : > { %983 = vst [vmem:[%s1557_s17 + $0x268] sm:$0xff] %v727_v44  ;;  %v477_v53 = vmax.f32 %v221_v50, 0.0  ;;  %v223_v55 = vld [vmem:[%s1542_s30 + $0x2a8] sm:$0xff]  ;;  %v224_v56 = vld [vmem:[%s1542_s30 + $0x2b0] sm:$0xff]  ;;  %v728_v57 = vmul.f32 0.1, %v472_v45 }
  0x7d   : > { %v729_v58 = vmul.f32 0.1, %v473_v46  ;;  %v730_v59 = vmul.f32 0.1, %v474_v47  ;;  %v731_v60 = vmul.f32 0.1, %v475_v51 }
  0x7e   : > { %v732_v61 = vmul.f32 0.1, %v476_v52  ;;  %v733_v62 = vmul.f32 0.1, %v477_v53  ;;  %984 = vst [vmem:[%s1557_s17 + $0x270] sm:$0xff] %v728_v57  ;;  %v478_v63 = vmax.f32 %v222_v54, 0.0 }
  0x7f   : > { %985 = vst [vmem:[%s1557_s17 + $0x278] sm:$0xff] %v729_v58  ;;  %986 = vst [vmem:[%s1557_s17 + $0x280] sm:$0xff] %v730_v59  ;;  %v479_v0 = vmax.f32 %v223_v55, 0.0  ;;  %v480_v1 = vmax.f32 %v224_v56, 0.0  ;;  %v225_v2 = vld [vmem:[%s1542_s30 + $0x2b8] sm:$0xff]  ;;  %v226_v3 = vld [vmem:[%s1542_s30 + $0x2c0] sm:$0xff] }
  0x80   : > { %v227_v4 = vld [vmem:[%s1542_s30 + $0x2c8] sm:$0xff]  ;;  %987 = vst [vmem:[%s1557_s17 + $0x288] sm:$0xff] %v731_v60  ;;  %988 = vst [vmem:[%s1557_s17 + $0x290] sm:$0xff] %v732_v61  ;;  %v481_v5 = vmax.f32 %v225_v2, 0.0  ;;  %v482_v6 = vmax.f32 %v226_v3, 0.0  ;;  %v228_v8 = vld [vmem:[%s1542_s30 + $0x2d0] sm:$0xff] }
  0x81   : > { %989 = vst [vmem:[%s1557_s17 + $0x298] sm:$0xff] %v733_v62  ;;  %v483_v7 = vmax.f32 %v227_v4, 0.0  ;;  %v229_v9 = vld [vmem:[%s1542_s30 + $0x2d8] sm:$0xff]  ;;  %v230_v10 = vld [vmem:[%s1542_s30 + $0x2e0] sm:$0xff]  ;;  %v734_v11 = vmul.f32 0.1, %v478_v63 }
  0x82   : > { %v735_v12 = vmul.f32 0.1, %v479_v0  ;;  %v736_v13 = vmul.f32 0.1, %v480_v1  ;;  %v737_v14 = vmul.f32 0.1, %v481_v5 }
  0x83   : > { %v738_v15 = vmul.f32 0.1, %v482_v6  ;;  %v739_v16 = vmul.f32 0.1, %v483_v7  ;;  %990 = vst [vmem:[%s1557_s17 + $0x2a0] sm:$0xff] %v734_v11  ;;  %v484_v17 = vmax.f32 %v228_v8, 0.0 }
  0x84   : > { %991 = vst [vmem:[%s1557_s17 + $0x2a8] sm:$0xff] %v735_v12  ;;  %992 = vst [vmem:[%s1557_s17 + $0x2b0] sm:$0xff] %v736_v13  ;;  %v485_v18 = vmax.f32 %v229_v9, 0.0  ;;  %v486_v19 = vmax.f32 %v230_v10, 0.0  ;;  %v231_v20 = vld [vmem:[%s1542_s30 + $0x2e8] sm:$0xff]  ;;  %v232_v21 = vld [vmem:[%s1542_s30 + $0x2f0] sm:$0xff] }
  0x85   : > { %v233_v22 = vld [vmem:[%s1542_s30 + $0x2f8] sm:$0xff]  ;;  %993 = vst [vmem:[%s1557_s17 + $0x2b8] sm:$0xff] %v737_v14  ;;  %994 = vst [vmem:[%s1557_s17 + $0x2c0] sm:$0xff] %v738_v15  ;;  %v487_v23 = vmax.f32 %v231_v20, 0.0  ;;  %v488_v24 = vmax.f32 %v232_v21, 0.0  ;;  %v234_v26 = vld [vmem:[%s1542_s30 + $0x300] sm:$0xff] }
  0x86   : > { %995 = vst [vmem:[%s1557_s17 + $0x2c8] sm:$0xff] %v739_v16  ;;  %v489_v25 = vmax.f32 %v233_v22, 0.0  ;;  %v235_v27 = vld [vmem:[%s1542_s30 + $0x308] sm:$0xff]  ;;  %v236_v28 = vld [vmem:[%s1542_s30 + $0x310] sm:$0xff]  ;;  %v740_v29 = vmul.f32 0.1, %v484_v17 }
  0x87   : > { %v741_v30 = vmul.f32 0.1, %v485_v18  ;;  %v742_v31 = vmul.f32 0.1, %v486_v19  ;;  %v743_v32 = vmul.f32 0.1, %v487_v23 }
  0x88   : > { %v744_v33 = vmul.f32 0.1, %v488_v24  ;;  %v745_v34 = vmul.f32 0.1, %v489_v25  ;;  %996 = vst [vmem:[%s1557_s17 + $0x2d0] sm:$0xff] %v740_v29  ;;  %v490_v35 = vmax.f32 %v234_v26, 0.0 }
  0x89   : > { %997 = vst [vmem:[%s1557_s17 + $0x2d8] sm:$0xff] %v741_v30  ;;  %998 = vst [vmem:[%s1557_s17 + $0x2e0] sm:$0xff] %v742_v31  ;;  %v491_v36 = vmax.f32 %v235_v27, 0.0  ;;  %v492_v37 = vmax.f32 %v236_v28, 0.0  ;;  %v237_v38 = vld [vmem:[%s1542_s30 + $0x318] sm:$0xff]  ;;  %v238_v39 = vld [vmem:[%s1542_s30 + $0x320] sm:$0xff] }
  0x8a   : > { %v239_v40 = vld [vmem:[%s1542_s30 + $0x328] sm:$0xff]  ;;  %999 = vst [vmem:[%s1557_s17 + $0x2e8] sm:$0xff] %v743_v32  ;;  %1000 = vst [vmem:[%s1557_s17 + $0x2f0] sm:$0xff] %v744_v33  ;;  %v493_v41 = vmax.f32 %v237_v38, 0.0  ;;  %v494_v42 = vmax.f32 %v238_v39, 0.0  ;;  %v240_v44 = vld [vmem:[%s1542_s30 + $0x330] sm:$0xff] }
  0x8b   : > { %1001 = vst [vmem:[%s1557_s17 + $0x2f8] sm:$0xff] %v745_v34  ;;  %v495_v43 = vmax.f32 %v239_v40, 0.0  ;;  %v241_v45 = vld [vmem:[%s1542_s30 + $0x338] sm:$0xff]  ;;  %v242_v46 = vld [vmem:[%s1542_s30 + $0x340] sm:$0xff]  ;;  %v746_v47 = vmul.f32 0.1, %v490_v35 }
  0x8c   : > { %v747_v48 = vmul.f32 0.1, %v491_v36  ;;  %v748_v49 = vmul.f32 0.1, %v492_v37  ;;  %v749_v50 = vmul.f32 0.1, %v493_v41 }
  0x8d   : > { %v750_v51 = vmul.f32 0.1, %v494_v42  ;;  %v751_v52 = vmul.f32 0.1, %v495_v43  ;;  %1002 = vst [vmem:[%s1557_s17 + $0x300] sm:$0xff] %v746_v47  ;;  %v496_v53 = vmax.f32 %v240_v44, 0.0 }
  0x8e   : > { %1003 = vst [vmem:[%s1557_s17 + $0x308] sm:$0xff] %v747_v48  ;;  %1004 = vst [vmem:[%s1557_s17 + $0x310] sm:$0xff] %v748_v49  ;;  %v497_v54 = vmax.f32 %v241_v45, 0.0  ;;  %v498_v55 = vmax.f32 %v242_v46, 0.0  ;;  %v243_v56 = vld [vmem:[%s1542_s30 + $0x348] sm:$0xff]  ;;  %v244_v57 = vld [vmem:[%s1542_s30 + $0x350] sm:$0xff] }
  0x8f   : > { %v245_v58 = vld [vmem:[%s1542_s30 + $0x358] sm:$0xff]  ;;  %1005 = vst [vmem:[%s1557_s17 + $0x318] sm:$0xff] %v749_v50  ;;  %1006 = vst [vmem:[%s1557_s17 + $0x320] sm:$0xff] %v750_v51  ;;  %v499_v59 = vmax.f32 %v243_v56, 0.0  ;;  %v500_v60 = vmax.f32 %v244_v57, 0.0  ;;  %v246_v62 = vld [vmem:[%s1542_s30 + $0x360] sm:$0xff] }
  0x90   : > { %1007 = vst [vmem:[%s1557_s17 + $0x328] sm:$0xff] %v751_v52  ;;  %v501_v61 = vmax.f32 %v245_v58, 0.0  ;;  %v247_v63 = vld [vmem:[%s1542_s30 + $0x368] sm:$0xff]  ;;  %v248_v0 = vld [vmem:[%s1542_s30 + $0x370] sm:$0xff]  ;;  %v752_v1 = vmul.f32 0.1, %v496_v53 }
  0x91   : > { %v753_v2 = vmul.f32 0.1, %v497_v54  ;;  %v754_v3 = vmul.f32 0.1, %v498_v55  ;;  %v755_v4 = vmul.f32 0.1, %v499_v59 }
  0x92   : > { %v756_v5 = vmul.f32 0.1, %v500_v60  ;;  %v757_v6 = vmul.f32 0.1, %v501_v61  ;;  %1008 = vst [vmem:[%s1557_s17 + $0x330] sm:$0xff] %v752_v1  ;;  %v502_v7 = vmax.f32 %v246_v62, 0.0 }
  0x93   : > { %1009 = vst [vmem:[%s1557_s17 + $0x338] sm:$0xff] %v753_v2  ;;  %1010 = vst [vmem:[%s1557_s17 + $0x340] sm:$0xff] %v754_v3  ;;  %v503_v8 = vmax.f32 %v247_v63, 0.0  ;;  %v504_v9 = vmax.f32 %v248_v0, 0.0  ;;  %v249_v10 = vld [vmem:[%s1542_s30 + $0x378] sm:$0xff]  ;;  %v250_v11 = vld [vmem:[%s1542_s30 + $0x380] sm:$0xff] }
  0x94   : > { %v251_v12 = vld [vmem:[%s1542_s30 + $0x388] sm:$0xff]  ;;  %1011 = vst [vmem:[%s1557_s17 + $0x348] sm:$0xff] %v755_v4  ;;  %1012 = vst [vmem:[%s1557_s17 + $0x350] sm:$0xff] %v756_v5  ;;  %v505_v13 = vmax.f32 %v249_v10, 0.0  ;;  %v506_v14 = vmax.f32 %v250_v11, 0.0  ;;  %v252_v16 = vld [vmem:[%s1542_s30 + $0x390] sm:$0xff] }
  0x95   : > { %1013 = vst [vmem:[%s1557_s17 + $0x358] sm:$0xff] %v757_v6  ;;  %v507_v15 = vmax.f32 %v251_v12, 0.0  ;;  %v253_v17 = vld [vmem:[%s1542_s30 + $0x398] sm:$0xff]  ;;  %v254_v18 = vld [vmem:[%s1542_s30 + $0x3a0] sm:$0xff]  ;;  %v758_v19 = vmul.f32 0.1, %v502_v7 }
  0x96   : > { %v759_v20 = vmul.f32 0.1, %v503_v8  ;;  %v760_v21 = vmul.f32 0.1, %v504_v9  ;;  %v761_v22 = vmul.f32 0.1, %v505_v13 }
  0x97   : > { %v762_v23 = vmul.f32 0.1, %v506_v14  ;;  %v763_v24 = vmul.f32 0.1, %v507_v15  ;;  %1014 = vst [vmem:[%s1557_s17 + $0x360] sm:$0xff] %v758_v19  ;;  %v508_v25 = vmax.f32 %v252_v16, 0.0 }
  0x98   : > { %1015 = vst [vmem:[%s1557_s17 + $0x368] sm:$0xff] %v759_v20  ;;  %1016 = vst [vmem:[%s1557_s17 + $0x370] sm:$0xff] %v760_v21  ;;  %v509_v26 = vmax.f32 %v253_v17, 0.0  ;;  %v510_v27 = vmax.f32 %v254_v18, 0.0  ;;  %v255_v28 = vld [vmem:[%s1542_s30 + $0x3a8] sm:$0xff]  ;;  %v256_v29 = vld [vmem:[%s1542_s30 + $0x3b0] sm:$0xff] }
  0x99   : > { %v257_v30 = vld [vmem:[%s1542_s30 + $0x3b8] sm:$0xff]  ;;  %1017 = vst [vmem:[%s1557_s17 + $0x378] sm:$0xff] %v761_v22  ;;  %1018 = vst [vmem:[%s1557_s17 + $0x380] sm:$0xff] %v762_v23  ;;  %v511_v31 = vmax.f32 %v255_v28, 0.0  ;;  %v512_v32 = vmax.f32 %v256_v29, 0.0  ;;  %v258_v34 = vld [vmem:[%s1542_s30 + $0x3c0] sm:$0xff] }
  0x9a   : > { %1019 = vst [vmem:[%s1557_s17 + $0x388] sm:$0xff] %v763_v24  ;;  %v513_v33 = vmax.f32 %v257_v30, 0.0  ;;  %v259_v35 = vld [vmem:[%s1542_s30 + $0x3c8] sm:$0xff]  ;;  %v260_v36 = vld [vmem:[%s1542_s30 + $0x3d0] sm:$0xff]  ;;  %v764_v37 = vmul.f32 0.1, %v508_v25 }
  0x9b   : > { %v765_v38 = vmul.f32 0.1, %v509_v26  ;;  %v766_v39 = vmul.f32 0.1, %v510_v27  ;;  %v767_v40 = vmul.f32 0.1, %v511_v31 }
  0x9c   : > { %v768_v41 = vmul.f32 0.1, %v512_v32  ;;  %v769_v42 = vmul.f32 0.1, %v513_v33  ;;  %1020 = vst [vmem:[%s1557_s17 + $0x390] sm:$0xff] %v764_v37  ;;  %v514_v43 = vmax.f32 %v258_v34, 0.0 }
  0x9d   : > { %1021 = vst [vmem:[%s1557_s17 + $0x398] sm:$0xff] %v765_v38  ;;  %1022 = vst [vmem:[%s1557_s17 + $0x3a0] sm:$0xff] %v766_v39  ;;  %v515_v44 = vmax.f32 %v259_v35, 0.0  ;;  %v516_v45 = vmax.f32 %v260_v36, 0.0  ;;  %v261_v46 = vld [vmem:[%s1542_s30 + $0x3d8] sm:$0xff]  ;;  %v262_v47 = vld [vmem:[%s1542_s30 + $0x3e0] sm:$0xff] }
  0x9e   : > { %v263_v48 = vld [vmem:[%s1542_s30 + $0x3e8] sm:$0xff]  ;;  %1023 = vst [vmem:[%s1557_s17 + $0x3a8] sm:$0xff] %v767_v40  ;;  %1024 = vst [vmem:[%s1557_s17 + $0x3b0] sm:$0xff] %v768_v41  ;;  %v517_v49 = vmax.f32 %v261_v46, 0.0  ;;  %v518_v50 = vmax.f32 %v262_v47, 0.0  ;;  %v264_v52 = vld [vmem:[%s1542_s30 + $0x3f0] sm:$0xff] }
  0x9f   : > { %1025 = vst [vmem:[%s1557_s17 + $0x3b8] sm:$0xff] %v769_v42  ;;  %v519_v51 = vmax.f32 %v263_v48, 0.0  ;;  %v265_v53 = vld [vmem:[%s1542_s30 + $0x3f8] sm:$0xff]  ;;  %v266_v54 = vld [vmem:[%s1542_s30 + $0x400] sm:$0xff]  ;;  %v770_v55 = vmul.f32 0.1, %v514_v43 }
  0xa0   : > { %v771_v56 = vmul.f32 0.1, %v515_v44  ;;  %v772_v57 = vmul.f32 0.1, %v516_v45  ;;  %v773_v58 = vmul.f32 0.1, %v517_v49 }
  0xa1   : > { %v774_v59 = vmul.f32 0.1, %v518_v50  ;;  %v775_v60 = vmul.f32 0.1, %v519_v51  ;;  %1026 = vst [vmem:[%s1557_s17 + $0x3c0] sm:$0xff] %v770_v55  ;;  %v520_v61 = vmax.f32 %v264_v52, 0.0 }
  0xa2   : > { %1027 = vst [vmem:[%s1557_s17 + $0x3c8] sm:$0xff] %v771_v56  ;;  %1028 = vst [vmem:[%s1557_s17 + $0x3d0] sm:$0xff] %v772_v57  ;;  %v521_v62 = vmax.f32 %v265_v53, 0.0  ;;  %v522_v63 = vmax.f32 %v266_v54, 0.0  ;;  %v267_v0 = vld [vmem:[%s1542_s30 + $0x408] sm:$0xff]  ;;  %v268_v1 = vld [vmem:[%s1542_s30 + $0x410] sm:$0xff] }
  0xa3   : > { %v269_v2 = vld [vmem:[%s1542_s30 + $0x418] sm:$0xff]  ;;  %1029 = vst [vmem:[%s1557_s17 + $0x3d8] sm:$0xff] %v773_v58  ;;  %1030 = vst [vmem:[%s1557_s17 + $0x3e0] sm:$0xff] %v774_v59  ;;  %v523_v3 = vmax.f32 %v267_v0, 0.0  ;;  %v524_v4 = vmax.f32 %v268_v1, 0.0  ;;  %v270_v6 = vld [vmem:[%s1542_s30 + $0x420] sm:$0xff] }
  0xa4   : > { %1031 = vst [vmem:[%s1557_s17 + $0x3e8] sm:$0xff] %v775_v60  ;;  %v525_v5 = vmax.f32 %v269_v2, 0.0  ;;  %v271_v7 = vld [vmem:[%s1542_s30 + $0x428] sm:$0xff]  ;;  %v272_v8 = vld [vmem:[%s1542_s30 + $0x430] sm:$0xff]  ;;  %v776_v9 = vmul.f32 0.1, %v520_v61 }
  0xa5   : > { %v777_v10 = vmul.f32 0.1, %v521_v62  ;;  %v778_v11 = vmul.f32 0.1, %v522_v63  ;;  %v779_v12 = vmul.f32 0.1, %v523_v3 }
  0xa6   : > { %v780_v13 = vmul.f32 0.1, %v524_v4  ;;  %v781_v14 = vmul.f32 0.1, %v525_v5  ;;  %1032 = vst [vmem:[%s1557_s17 + $0x3f0] sm:$0xff] %v776_v9  ;;  %v526_v15 = vmax.f32 %v270_v6, 0.0 }
  0xa7   : > { %1033 = vst [vmem:[%s1557_s17 + $0x3f8] sm:$0xff] %v777_v10  ;;  %1034 = vst [vmem:[%s1557_s17 + $0x400] sm:$0xff] %v778_v11  ;;  %v527_v16 = vmax.f32 %v271_v7, 0.0  ;;  %v528_v17 = vmax.f32 %v272_v8, 0.0  ;;  %v273_v18 = vld [vmem:[%s1542_s30 + $0x438] sm:$0xff]  ;;  %v274_v19 = vld [vmem:[%s1542_s30 + $0x440] sm:$0xff] }
  0xa8   : > { %v275_v20 = vld [vmem:[%s1542_s30 + $0x448] sm:$0xff]  ;;  %1035 = vst [vmem:[%s1557_s17 + $0x408] sm:$0xff] %v779_v12  ;;  %1036 = vst [vmem:[%s1557_s17 + $0x410] sm:$0xff] %v780_v13  ;;  %v529_v21 = vmax.f32 %v273_v18, 0.0  ;;  %v530_v22 = vmax.f32 %v274_v19, 0.0  ;;  %v276_v24 = vld [vmem:[%s1542_s30 + $0x450] sm:$0xff] }
  0xa9   : > { %1037 = vst [vmem:[%s1557_s17 + $0x418] sm:$0xff] %v781_v14  ;;  %v531_v23 = vmax.f32 %v275_v20, 0.0  ;;  %v277_v25 = vld [vmem:[%s1542_s30 + $0x458] sm:$0xff]  ;;  %v278_v26 = vld [vmem:[%s1542_s30 + $0x460] sm:$0xff]  ;;  %v782_v27 = vmul.f32 0.1, %v526_v15 }
  0xaa   : > { %v783_v28 = vmul.f32 0.1, %v527_v16  ;;  %v784_v29 = vmul.f32 0.1, %v528_v17  ;;  %v785_v30 = vmul.f32 0.1, %v529_v21 }
  0xab   : > { %v786_v31 = vmul.f32 0.1, %v530_v22  ;;  %v787_v32 = vmul.f32 0.1, %v531_v23  ;;  %1038 = vst [vmem:[%s1557_s17 + $0x420] sm:$0xff] %v782_v27  ;;  %v532_v33 = vmax.f32 %v276_v24, 0.0 }
  0xac   : > { %1039 = vst [vmem:[%s1557_s17 + $0x428] sm:$0xff] %v783_v28  ;;  %1040 = vst [vmem:[%s1557_s17 + $0x430] sm:$0xff] %v784_v29  ;;  %v533_v34 = vmax.f32 %v277_v25, 0.0  ;;  %v534_v35 = vmax.f32 %v278_v26, 0.0  ;;  %v279_v36 = vld [vmem:[%s1542_s30 + $0x468] sm:$0xff]  ;;  %v280_v37 = vld [vmem:[%s1542_s30 + $0x470] sm:$0xff] }
  0xad   : > { %v281_v38 = vld [vmem:[%s1542_s30 + $0x478] sm:$0xff]  ;;  %1041 = vst [vmem:[%s1557_s17 + $0x438] sm:$0xff] %v785_v30  ;;  %1042 = vst [vmem:[%s1557_s17 + $0x440] sm:$0xff] %v786_v31  ;;  %v535_v39 = vmax.f32 %v279_v36, 0.0  ;;  %v536_v40 = vmax.f32 %v280_v37, 0.0  ;;  %v282_v42 = vld [vmem:[%s1542_s30 + $0x480] sm:$0xff] }
  0xae   : > { %1043 = vst [vmem:[%s1557_s17 + $0x448] sm:$0xff] %v787_v32  ;;  %v537_v41 = vmax.f32 %v281_v38, 0.0  ;;  %v283_v43 = vld [vmem:[%s1542_s30 + $0x488] sm:$0xff]  ;;  %v284_v44 = vld [vmem:[%s1542_s30 + $0x490] sm:$0xff]  ;;  %v788_v45 = vmul.f32 0.1, %v532_v33 }
  0xaf   : > { %v789_v46 = vmul.f32 0.1, %v533_v34  ;;  %v790_v47 = vmul.f32 0.1, %v534_v35  ;;  %v791_v48 = vmul.f32 0.1, %v535_v39 }
  0xb0   : > { %v792_v49 = vmul.f32 0.1, %v536_v40  ;;  %v793_v50 = vmul.f32 0.1, %v537_v41  ;;  %1044 = vst [vmem:[%s1557_s17 + $0x450] sm:$0xff] %v788_v45  ;;  %v538_v51 = vmax.f32 %v282_v42, 0.0 }
  0xb1   : > { %1045 = vst [vmem:[%s1557_s17 + $0x458] sm:$0xff] %v789_v46  ;;  %1046 = vst [vmem:[%s1557_s17 + $0x460] sm:$0xff] %v790_v47  ;;  %v539_v52 = vmax.f32 %v283_v43, 0.0  ;;  %v540_v53 = vmax.f32 %v284_v44, 0.0  ;;  %v285_v54 = vld [vmem:[%s1542_s30 + $0x498] sm:$0xff]  ;;  %v286_v55 = vld [vmem:[%s1542_s30 + $0x4a0] sm:$0xff] }
  0xb2   : > { %v287_v56 = vld [vmem:[%s1542_s30 + $0x4a8] sm:$0xff]  ;;  %1047 = vst [vmem:[%s1557_s17 + $0x468] sm:$0xff] %v791_v48  ;;  %1048 = vst [vmem:[%s1557_s17 + $0x470] sm:$0xff] %v792_v49  ;;  %v541_v57 = vmax.f32 %v285_v54, 0.0  ;;  %v542_v58 = vmax.f32 %v286_v55, 0.0  ;;  %v288_v60 = vld [vmem:[%s1542_s30 + $0x4b0] sm:$0xff] }
  0xb3   : > { %1049 = vst [vmem:[%s1557_s17 + $0x478] sm:$0xff] %v793_v50  ;;  %v543_v59 = vmax.f32 %v287_v56, 0.0  ;;  %v289_v61 = vld [vmem:[%s1542_s30 + $0x4b8] sm:$0xff]  ;;  %v290_v62 = vld [vmem:[%s1542_s30 + $0x4c0] sm:$0xff]  ;;  %v794_v63 = vmul.f32 0.1, %v538_v51 }
  0xb4   : > { %v795_v0 = vmul.f32 0.1, %v539_v52  ;;  %v796_v1 = vmul.f32 0.1, %v540_v53  ;;  %v797_v2 = vmul.f32 0.1, %v541_v57 }
  0xb5   : > { %v798_v3 = vmul.f32 0.1, %v542_v58  ;;  %v799_v4 = vmul.f32 0.1, %v543_v59  ;;  %1050 = vst [vmem:[%s1557_s17 + $0x480] sm:$0xff] %v794_v63  ;;  %v544_v5 = vmax.f32 %v288_v60, 0.0 }
  0xb6   : > { %1051 = vst [vmem:[%s1557_s17 + $0x488] sm:$0xff] %v795_v0  ;;  %1052 = vst [vmem:[%s1557_s17 + $0x490] sm:$0xff] %v796_v1  ;;  %v545_v6 = vmax.f32 %v289_v61, 0.0  ;;  %v546_v7 = vmax.f32 %v290_v62, 0.0  ;;  %v291_v8 = vld [vmem:[%s1542_s30 + $0x4c8] sm:$0xff]  ;;  %v292_v9 = vld [vmem:[%s1542_s30 + $0x4d0] sm:$0xff] }
  0xb7   : > { %v293_v10 = vld [vmem:[%s1542_s30 + $0x4d8] sm:$0xff]  ;;  %1053 = vst [vmem:[%s1557_s17 + $0x498] sm:$0xff] %v797_v2  ;;  %1054 = vst [vmem:[%s1557_s17 + $0x4a0] sm:$0xff] %v798_v3  ;;  %v547_v11 = vmax.f32 %v291_v8, 0.0  ;;  %v548_v12 = vmax.f32 %v292_v9, 0.0  ;;  %v294_v14 = vld [vmem:[%s1542_s30 + $0x4e0] sm:$0xff] }
  0xb8   : > { %1055 = vst [vmem:[%s1557_s17 + $0x4a8] sm:$0xff] %v799_v4  ;;  %v549_v13 = vmax.f32 %v293_v10, 0.0  ;;  %v295_v15 = vld [vmem:[%s1542_s30 + $0x4e8] sm:$0xff]  ;;  %v296_v16 = vld [vmem:[%s1542_s30 + $0x4f0] sm:$0xff]  ;;  %v800_v17 = vmul.f32 0.1, %v544_v5 }
  0xb9   : > { %v801_v18 = vmul.f32 0.1, %v545_v6  ;;  %v802_v19 = vmul.f32 0.1, %v546_v7  ;;  %v803_v20 = vmul.f32 0.1, %v547_v11 }
  0xba   : > { %v804_v21 = vmul.f32 0.1, %v548_v12  ;;  %v805_v22 = vmul.f32 0.1, %v549_v13  ;;  %1056 = vst [vmem:[%s1557_s17 + $0x4b0] sm:$0xff] %v800_v17  ;;  %v550_v23 = vmax.f32 %v294_v14, 0.0 }
  0xbb   : > { %1057 = vst [vmem:[%s1557_s17 + $0x4b8] sm:$0xff] %v801_v18  ;;  %1058 = vst [vmem:[%s1557_s17 + $0x4c0] sm:$0xff] %v802_v19  ;;  %v551_v24 = vmax.f32 %v295_v15, 0.0  ;;  %v552_v25 = vmax.f32 %v296_v16, 0.0  ;;  %v297_v26 = vld [vmem:[%s1542_s30 + $0x4f8] sm:$0xff]  ;;  %v298_v27 = vld [vmem:[%s1542_s30 + $0x500] sm:$0xff] }
  0xbc   : > { %v299_v28 = vld [vmem:[%s1542_s30 + $0x508] sm:$0xff]  ;;  %1059 = vst [vmem:[%s1557_s17 + $0x4c8] sm:$0xff] %v803_v20  ;;  %1060 = vst [vmem:[%s1557_s17 + $0x4d0] sm:$0xff] %v804_v21  ;;  %v553_v29 = vmax.f32 %v297_v26, 0.0  ;;  %v554_v30 = vmax.f32 %v298_v27, 0.0  ;;  %v300_v32 = vld [vmem:[%s1542_s30 + $0x510] sm:$0xff] }
  0xbd   : > { %1061 = vst [vmem:[%s1557_s17 + $0x4d8] sm:$0xff] %v805_v22  ;;  %v555_v31 = vmax.f32 %v299_v28, 0.0  ;;  %v301_v33 = vld [vmem:[%s1542_s30 + $0x518] sm:$0xff]  ;;  %v302_v34 = vld [vmem:[%s1542_s30 + $0x520] sm:$0xff]  ;;  %v806_v35 = vmul.f32 0.1, %v550_v23 }
  0xbe   : > { %v807_v36 = vmul.f32 0.1, %v551_v24  ;;  %v808_v37 = vmul.f32 0.1, %v552_v25  ;;  %v809_v38 = vmul.f32 0.1, %v553_v29 }
  0xbf   : > { %v810_v39 = vmul.f32 0.1, %v554_v30  ;;  %v811_v40 = vmul.f32 0.1, %v555_v31  ;;  %1062 = vst [vmem:[%s1557_s17 + $0x4e0] sm:$0xff] %v806_v35  ;;  %v556_v41 = vmax.f32 %v300_v32, 0.0 }
  0xc0   : > { %1063 = vst [vmem:[%s1557_s17 + $0x4e8] sm:$0xff] %v807_v36  ;;  %1064 = vst [vmem:[%s1557_s17 + $0x4f0] sm:$0xff] %v808_v37  ;;  %v557_v42 = vmax.f32 %v301_v33, 0.0  ;;  %v558_v43 = vmax.f32 %v302_v34, 0.0  ;;  %v303_v44 = vld [vmem:[%s1542_s30 + $0x528] sm:$0xff]  ;;  %v304_v45 = vld [vmem:[%s1542_s30 + $0x530] sm:$0xff] }
  0xc1   : > { %v305_v46 = vld [vmem:[%s1542_s30 + $0x538] sm:$0xff]  ;;  %1065 = vst [vmem:[%s1557_s17 + $0x4f8] sm:$0xff] %v809_v38  ;;  %1066 = vst [vmem:[%s1557_s17 + $0x500] sm:$0xff] %v810_v39  ;;  %v559_v47 = vmax.f32 %v303_v44, 0.0  ;;  %v560_v48 = vmax.f32 %v304_v45, 0.0  ;;  %v306_v50 = vld [vmem:[%s1542_s30 + $0x540] sm:$0xff] }
  0xc2   : > { %1067 = vst [vmem:[%s1557_s17 + $0x508] sm:$0xff] %v811_v40  ;;  %v561_v49 = vmax.f32 %v305_v46, 0.0  ;;  %v307_v51 = vld [vmem:[%s1542_s30 + $0x548] sm:$0xff]  ;;  %v308_v52 = vld [vmem:[%s1542_s30 + $0x550] sm:$0xff]  ;;  %v812_v53 = vmul.f32 0.1, %v556_v41 }
  0xc3   : > { %v813_v54 = vmul.f32 0.1, %v557_v42  ;;  %v814_v55 = vmul.f32 0.1, %v558_v43  ;;  %v815_v56 = vmul.f32 0.1, %v559_v47 }
  0xc4   : > { %v816_v57 = vmul.f32 0.1, %v560_v48  ;;  %v817_v58 = vmul.f32 0.1, %v561_v49  ;;  %1068 = vst [vmem:[%s1557_s17 + $0x510] sm:$0xff] %v812_v53  ;;  %v562_v59 = vmax.f32 %v306_v50, 0.0 }
  0xc5   : > { %1069 = vst [vmem:[%s1557_s17 + $0x518] sm:$0xff] %v813_v54  ;;  %1070 = vst [vmem:[%s1557_s17 + $0x520] sm:$0xff] %v814_v55  ;;  %v563_v60 = vmax.f32 %v307_v51, 0.0  ;;  %v564_v61 = vmax.f32 %v308_v52, 0.0  ;;  %v309_v62 = vld [vmem:[%s1542_s30 + $0x558] sm:$0xff]  ;;  %v310_v63 = vld [vmem:[%s1542_s30 + $0x560] sm:$0xff] }
  0xc6   : > { %v311_v0 = vld [vmem:[%s1542_s30 + $0x568] sm:$0xff]  ;;  %1071 = vst [vmem:[%s1557_s17 + $0x528] sm:$0xff] %v815_v56  ;;  %1072 = vst [vmem:[%s1557_s17 + $0x530] sm:$0xff] %v816_v57  ;;  %v565_v1 = vmax.f32 %v309_v62, 0.0  ;;  %v566_v2 = vmax.f32 %v310_v63, 0.0  ;;  %v312_v4 = vld [vmem:[%s1542_s30 + $0x570] sm:$0xff] }
  0xc7   : > { %1073 = vst [vmem:[%s1557_s17 + $0x538] sm:$0xff] %v817_v58  ;;  %v567_v3 = vmax.f32 %v311_v0, 0.0  ;;  %v313_v5 = vld [vmem:[%s1542_s30 + $0x578] sm:$0xff]  ;;  %v314_v6 = vld [vmem:[%s1542_s30 + $0x580] sm:$0xff]  ;;  %v818_v7 = vmul.f32 0.1, %v562_v59 }
  0xc8   : > { %v819_v8 = vmul.f32 0.1, %v563_v60  ;;  %v820_v9 = vmul.f32 0.1, %v564_v61  ;;  %v821_v10 = vmul.f32 0.1, %v565_v1 }
  0xc9   : > { %v822_v11 = vmul.f32 0.1, %v566_v2  ;;  %v823_v12 = vmul.f32 0.1, %v567_v3  ;;  %1074 = vst [vmem:[%s1557_s17 + $0x540] sm:$0xff] %v818_v7  ;;  %v568_v13 = vmax.f32 %v312_v4, 0.0 }
  0xca   : > { %1075 = vst [vmem:[%s1557_s17 + $0x548] sm:$0xff] %v819_v8  ;;  %1076 = vst [vmem:[%s1557_s17 + $0x550] sm:$0xff] %v820_v9  ;;  %v569_v14 = vmax.f32 %v313_v5, 0.0  ;;  %v570_v15 = vmax.f32 %v314_v6, 0.0  ;;  %v315_v16 = vld [vmem:[%s1542_s30 + $0x588] sm:$0xff]  ;;  %v316_v17 = vld [vmem:[%s1542_s30 + $0x590] sm:$0xff] }
  0xcb   : > { %v317_v18 = vld [vmem:[%s1542_s30 + $0x598] sm:$0xff]  ;;  %1077 = vst [vmem:[%s1557_s17 + $0x558] sm:$0xff] %v821_v10  ;;  %1078 = vst [vmem:[%s1557_s17 + $0x560] sm:$0xff] %v822_v11  ;;  %v571_v19 = vmax.f32 %v315_v16, 0.0  ;;  %v572_v20 = vmax.f32 %v316_v17, 0.0  ;;  %v318_v22 = vld [vmem:[%s1542_s30 + $0x5a0] sm:$0xff] }
  0xcc   : > { %1079 = vst [vmem:[%s1557_s17 + $0x568] sm:$0xff] %v823_v12  ;;  %v573_v21 = vmax.f32 %v317_v18, 0.0  ;;  %v319_v23 = vld [vmem:[%s1542_s30 + $0x5a8] sm:$0xff]  ;;  %v320_v24 = vld [vmem:[%s1542_s30 + $0x5b0] sm:$0xff]  ;;  %v824_v25 = vmul.f32 0.1, %v568_v13 }
  0xcd   : > { %v825_v26 = vmul.f32 0.1, %v569_v14  ;;  %v826_v27 = vmul.f32 0.1, %v570_v15  ;;  %v827_v28 = vmul.f32 0.1, %v571_v19 }
  0xce   : > { %v828_v29 = vmul.f32 0.1, %v572_v20  ;;  %v829_v30 = vmul.f32 0.1, %v573_v21  ;;  %1080 = vst [vmem:[%s1557_s17 + $0x570] sm:$0xff] %v824_v25  ;;  %v574_v31 = vmax.f32 %v318_v22, 0.0 }
  0xcf   : > { %1081 = vst [vmem:[%s1557_s17 + $0x578] sm:$0xff] %v825_v26  ;;  %1082 = vst [vmem:[%s1557_s17 + $0x580] sm:$0xff] %v826_v27  ;;  %v575_v32 = vmax.f32 %v319_v23, 0.0  ;;  %v576_v33 = vmax.f32 %v320_v24, 0.0  ;;  %v321_v34 = vld [vmem:[%s1542_s30 + $0x5b8] sm:$0xff]  ;;  %v322_v35 = vld [vmem:[%s1542_s30 + $0x5c0] sm:$0xff] }
  0xd0   : > { %v323_v36 = vld [vmem:[%s1542_s30 + $0x5c8] sm:$0xff]  ;;  %1083 = vst [vmem:[%s1557_s17 + $0x588] sm:$0xff] %v827_v28  ;;  %1084 = vst [vmem:[%s1557_s17 + $0x590] sm:$0xff] %v828_v29  ;;  %v577_v37 = vmax.f32 %v321_v34, 0.0  ;;  %v578_v38 = vmax.f32 %v322_v35, 0.0  ;;  %v324_v40 = vld [vmem:[%s1542_s30 + $0x5d0] sm:$0xff] }
  0xd1   : > { %1085 = vst [vmem:[%s1557_s17 + $0x598] sm:$0xff] %v829_v30  ;;  %v579_v39 = vmax.f32 %v323_v36, 0.0  ;;  %v325_v41 = vld [vmem:[%s1542_s30 + $0x5d8] sm:$0xff]  ;;  %v326_v42 = vld [vmem:[%s1542_s30 + $0x5e0] sm:$0xff]  ;;  %v830_v43 = vmul.f32 0.1, %v574_v31 }
  0xd2   : > { %v831_v44 = vmul.f32 0.1, %v575_v32  ;;  %v832_v45 = vmul.f32 0.1, %v576_v33  ;;  %v833_v46 = vmul.f32 0.1, %v577_v37 }
  0xd3   : > { %v834_v47 = vmul.f32 0.1, %v578_v38  ;;  %v835_v48 = vmul.f32 0.1, %v579_v39  ;;  %1086 = vst [vmem:[%s1557_s17 + $0x5a0] sm:$0xff] %v830_v43  ;;  %v580_v49 = vmax.f32 %v324_v40, 0.0 }
  0xd4   : > { %1087 = vst [vmem:[%s1557_s17 + $0x5a8] sm:$0xff] %v831_v44  ;;  %1088 = vst [vmem:[%s1557_s17 + $0x5b0] sm:$0xff] %v832_v45  ;;  %v581_v50 = vmax.f32 %v325_v41, 0.0  ;;  %v582_v51 = vmax.f32 %v326_v42, 0.0  ;;  %v327_v52 = vld [vmem:[%s1542_s30 + $0x5e8] sm:$0xff]  ;;  %v328_v53 = vld [vmem:[%s1542_s30 + $0x5f0] sm:$0xff] }
  0xd5   : > { %v329_v54 = vld [vmem:[%s1542_s30 + $0x5f8] sm:$0xff]  ;;  %1089 = vst [vmem:[%s1557_s17 + $0x5b8] sm:$0xff] %v833_v46  ;;  %1090 = vst [vmem:[%s1557_s17 + $0x5c0] sm:$0xff] %v834_v47  ;;  %v583_v55 = vmax.f32 %v327_v52, 0.0  ;;  %v584_v56 = vmax.f32 %v328_v53, 0.0  ;;  %v330_v58 = vld [vmem:[%s1542_s30 + $0x600] sm:$0xff] }
  0xd6   : > { %1091 = vst [vmem:[%s1557_s17 + $0x5c8] sm:$0xff] %v835_v48  ;;  %v585_v57 = vmax.f32 %v329_v54, 0.0  ;;  %v331_v59 = vld [vmem:[%s1542_s30 + $0x608] sm:$0xff]  ;;  %v332_v60 = vld [vmem:[%s1542_s30 + $0x610] sm:$0xff]  ;;  %v836_v61 = vmul.f32 0.1, %v580_v49 }
  0xd7   : > { %v837_v62 = vmul.f32 0.1, %v581_v50  ;;  %v838_v63 = vmul.f32 0.1, %v582_v51  ;;  %v839_v0 = vmul.f32 0.1, %v583_v55 }
  0xd8   : > { %v840_v1 = vmul.f32 0.1, %v584_v56  ;;  %v841_v2 = vmul.f32 0.1, %v585_v57  ;;  %1092 = vst [vmem:[%s1557_s17 + $0x5d0] sm:$0xff] %v836_v61  ;;  %v586_v3 = vmax.f32 %v330_v58, 0.0 }
  0xd9   : > { %1093 = vst [vmem:[%s1557_s17 + $0x5d8] sm:$0xff] %v837_v62  ;;  %1094 = vst [vmem:[%s1557_s17 + $0x5e0] sm:$0xff] %v838_v63  ;;  %v587_v4 = vmax.f32 %v331_v59, 0.0  ;;  %v588_v5 = vmax.f32 %v332_v60, 0.0  ;;  %v333_v6 = vld [vmem:[%s1542_s30 + $0x618] sm:$0xff]  ;;  %v334_v7 = vld [vmem:[%s1542_s30 + $0x620] sm:$0xff] }
  0xda   : > { %v335_v8 = vld [vmem:[%s1542_s30 + $0x628] sm:$0xff]  ;;  %1095 = vst [vmem:[%s1557_s17 + $0x5e8] sm:$0xff] %v839_v0  ;;  %1096 = vst [vmem:[%s1557_s17 + $0x5f0] sm:$0xff] %v840_v1  ;;  %v589_v9 = vmax.f32 %v333_v6, 0.0  ;;  %v590_v10 = vmax.f32 %v334_v7, 0.0  ;;  %v336_v12 = vld [vmem:[%s1542_s30 + $0x630] sm:$0xff] }
  0xdb   : > { %1097 = vst [vmem:[%s1557_s17 + $0x5f8] sm:$0xff] %v841_v2  ;;  %v591_v11 = vmax.f32 %v335_v8, 0.0  ;;  %v337_v13 = vld [vmem:[%s1542_s30 + $0x638] sm:$0xff]  ;;  %v338_v14 = vld [vmem:[%s1542_s30 + $0x640] sm:$0xff]  ;;  %v842_v15 = vmul.f32 0.1, %v586_v3 }
  0xdc   : > { %v843_v16 = vmul.f32 0.1, %v587_v4  ;;  %v844_v17 = vmul.f32 0.1, %v588_v5  ;;  %v845_v18 = vmul.f32 0.1, %v589_v9 }
  0xdd   : > { %v846_v19 = vmul.f32 0.1, %v590_v10  ;;  %v847_v20 = vmul.f32 0.1, %v591_v11  ;;  %1098 = vst [vmem:[%s1557_s17 + $0x600] sm:$0xff] %v842_v15  ;;  %v592_v21 = vmax.f32 %v336_v12, 0.0 }
  0xde   : > { %1099 = vst [vmem:[%s1557_s17 + $0x608] sm:$0xff] %v843_v16  ;;  %1100 = vst [vmem:[%s1557_s17 + $0x610] sm:$0xff] %v844_v17  ;;  %v593_v22 = vmax.f32 %v337_v13, 0.0  ;;  %v594_v23 = vmax.f32 %v338_v14, 0.0  ;;  %v339_v24 = vld [vmem:[%s1542_s30 + $0x648] sm:$0xff]  ;;  %v340_v25 = vld [vmem:[%s1542_s30 + $0x650] sm:$0xff] }
  0xdf   : > { %v341_v26 = vld [vmem:[%s1542_s30 + $0x658] sm:$0xff]  ;;  %1101 = vst [vmem:[%s1557_s17 + $0x618] sm:$0xff] %v845_v18  ;;  %1102 = vst [vmem:[%s1557_s17 + $0x620] sm:$0xff] %v846_v19  ;;  %v595_v27 = vmax.f32 %v339_v24, 0.0  ;;  %v596_v28 = vmax.f32 %v340_v25, 0.0  ;;  %v342_v30 = vld [vmem:[%s1542_s30 + $0x660] sm:$0xff] }
  0xe0   : > { %1103 = vst [vmem:[%s1557_s17 + $0x628] sm:$0xff] %v847_v20  ;;  %v597_v29 = vmax.f32 %v341_v26, 0.0  ;;  %v343_v31 = vld [vmem:[%s1542_s30 + $0x668] sm:$0xff]  ;;  %v344_v32 = vld [vmem:[%s1542_s30 + $0x670] sm:$0xff]  ;;  %v848_v33 = vmul.f32 0.1, %v592_v21 }
  0xe1   : > { %v849_v34 = vmul.f32 0.1, %v593_v22  ;;  %v850_v35 = vmul.f32 0.1, %v594_v23  ;;  %v851_v36 = vmul.f32 0.1, %v595_v27 }
  0xe2   : > { %v852_v37 = vmul.f32 0.1, %v596_v28  ;;  %v853_v38 = vmul.f32 0.1, %v597_v29  ;;  %1104 = vst [vmem:[%s1557_s17 + $0x630] sm:$0xff] %v848_v33  ;;  %v598_v39 = vmax.f32 %v342_v30, 0.0 }
  0xe3   : > { %1105 = vst [vmem:[%s1557_s17 + $0x638] sm:$0xff] %v849_v34  ;;  %1106 = vst [vmem:[%s1557_s17 + $0x640] sm:$0xff] %v850_v35  ;;  %v599_v40 = vmax.f32 %v343_v31, 0.0  ;;  %v600_v41 = vmax.f32 %v344_v32, 0.0  ;;  %v345_v42 = vld [vmem:[%s1542_s30 + $0x678] sm:$0xff]  ;;  %v346_v43 = vld [vmem:[%s1542_s30 + $0x680] sm:$0xff] }
  0xe4   : > { %v347_v44 = vld [vmem:[%s1542_s30 + $0x688] sm:$0xff]  ;;  %1107 = vst [vmem:[%s1557_s17 + $0x648] sm:$0xff] %v851_v36  ;;  %1108 = vst [vmem:[%s1557_s17 + $0x650] sm:$0xff] %v852_v37  ;;  %v601_v45 = vmax.f32 %v345_v42, 0.0  ;;  %v602_v46 = vmax.f32 %v346_v43, 0.0  ;;  %v348_v48 = vld [vmem:[%s1542_s30 + $0x690] sm:$0xff] }
  0xe5   : > { %1109 = vst [vmem:[%s1557_s17 + $0x658] sm:$0xff] %v853_v38  ;;  %v603_v47 = vmax.f32 %v347_v44, 0.0  ;;  %v349_v49 = vld [vmem:[%s1542_s30 + $0x698] sm:$0xff]  ;;  %v350_v50 = vld [vmem:[%s1542_s30 + $0x6a0] sm:$0xff]  ;;  %v854_v51 = vmul.f32 0.1, %v598_v39 }
  0xe6   : > { %v855_v52 = vmul.f32 0.1, %v599_v40  ;;  %v856_v53 = vmul.f32 0.1, %v600_v41  ;;  %v857_v54 = vmul.f32 0.1, %v601_v45 }
  0xe7   : > { %v858_v55 = vmul.f32 0.1, %v602_v46  ;;  %v859_v56 = vmul.f32 0.1, %v603_v47  ;;  %1110 = vst [vmem:[%s1557_s17 + $0x660] sm:$0xff] %v854_v51  ;;  %v604_v57 = vmax.f32 %v348_v48, 0.0 }
  0xe8   : > { %1111 = vst [vmem:[%s1557_s17 + $0x668] sm:$0xff] %v855_v52  ;;  %1112 = vst [vmem:[%s1557_s17 + $0x670] sm:$0xff] %v856_v53  ;;  %v605_v58 = vmax.f32 %v349_v49, 0.0  ;;  %v606_v59 = vmax.f32 %v350_v50, 0.0  ;;  %v351_v60 = vld [vmem:[%s1542_s30 + $0x6a8] sm:$0xff]  ;;  %v352_v61 = vld [vmem:[%s1542_s30 + $0x6b0] sm:$0xff] }
  0xe9   : > { %v353_v62 = vld [vmem:[%s1542_s30 + $0x6b8] sm:$0xff]  ;;  %1113 = vst [vmem:[%s1557_s17 + $0x678] sm:$0xff] %v857_v54  ;;  %1114 = vst [vmem:[%s1557_s17 + $0x680] sm:$0xff] %v858_v55  ;;  %v607_v63 = vmax.f32 %v351_v60, 0.0  ;;  %v608_v0 = vmax.f32 %v352_v61, 0.0  ;;  %v354_v2 = vld [vmem:[%s1542_s30 + $0x6c0] sm:$0xff] }
  0xea   : > { %1115 = vst [vmem:[%s1557_s17 + $0x688] sm:$0xff] %v859_v56  ;;  %v609_v1 = vmax.f32 %v353_v62, 0.0  ;;  %v355_v3 = vld [vmem:[%s1542_s30 + $0x6c8] sm:$0xff]  ;;  %v356_v4 = vld [vmem:[%s1542_s30 + $0x6d0] sm:$0xff]  ;;  %v860_v5 = vmul.f32 0.1, %v604_v57 }
  0xeb   : > { %v861_v6 = vmul.f32 0.1, %v605_v58  ;;  %v862_v7 = vmul.f32 0.1, %v606_v59  ;;  %v863_v8 = vmul.f32 0.1, %v607_v63 }
  0xec   : > { %v864_v9 = vmul.f32 0.1, %v608_v0  ;;  %v865_v10 = vmul.f32 0.1, %v609_v1  ;;  %1116 = vst [vmem:[%s1557_s17 + $0x690] sm:$0xff] %v860_v5  ;;  %v610_v11 = vmax.f32 %v354_v2, 0.0 }
  0xed   : > { %1117 = vst [vmem:[%s1557_s17 + $0x698] sm:$0xff] %v861_v6  ;;  %1118 = vst [vmem:[%s1557_s17 + $0x6a0] sm:$0xff] %v862_v7  ;;  %v611_v12 = vmax.f32 %v355_v3, 0.0  ;;  %v612_v13 = vmax.f32 %v356_v4, 0.0  ;;  %v357_v14 = vld [vmem:[%s1542_s30 + $0x6d8] sm:$0xff]  ;;  %v358_v15 = vld [vmem:[%s1542_s30 + $0x6e0] sm:$0xff] }
  0xee   : > { %v359_v16 = vld [vmem:[%s1542_s30 + $0x6e8] sm:$0xff]  ;;  %1119 = vst [vmem:[%s1557_s17 + $0x6a8] sm:$0xff] %v863_v8  ;;  %1120 = vst [vmem:[%s1557_s17 + $0x6b0] sm:$0xff] %v864_v9  ;;  %v613_v17 = vmax.f32 %v357_v14, 0.0  ;;  %v614_v18 = vmax.f32 %v358_v15, 0.0  ;;  %v360_v20 = vld [vmem:[%s1542_s30 + $0x6f0] sm:$0xff] }
  0xef   : > { %1121 = vst [vmem:[%s1557_s17 + $0x6b8] sm:$0xff] %v865_v10  ;;  %v615_v19 = vmax.f32 %v359_v16, 0.0  ;;  %v361_v21 = vld [vmem:[%s1542_s30 + $0x6f8] sm:$0xff]  ;;  %v362_v22 = vld [vmem:[%s1542_s30 + $0x700] sm:$0xff]  ;;  %v866_v23 = vmul.f32 0.1, %v610_v11 }
  0xf0   : > { %v867_v24 = vmul.f32 0.1, %v611_v12  ;;  %v868_v25 = vmul.f32 0.1, %v612_v13  ;;  %v869_v26 = vmul.f32 0.1, %v613_v17 }
  0xf1   : > { %v870_v27 = vmul.f32 0.1, %v614_v18  ;;  %v871_v28 = vmul.f32 0.1, %v615_v19  ;;  %1122 = vst [vmem:[%s1557_s17 + $0x6c0] sm:$0xff] %v866_v23  ;;  %v616_v29 = vmax.f32 %v360_v20, 0.0 }
  0xf2   : > { %1123 = vst [vmem:[%s1557_s17 + $0x6c8] sm:$0xff] %v867_v24  ;;  %1124 = vst [vmem:[%s1557_s17 + $0x6d0] sm:$0xff] %v868_v25  ;;  %v617_v30 = vmax.f32 %v361_v21, 0.0  ;;  %v618_v31 = vmax.f32 %v362_v22, 0.0  ;;  %v363_v32 = vld [vmem:[%s1542_s30 + $0x708] sm:$0xff]  ;;  %v364_v33 = vld [vmem:[%s1542_s30 + $0x710] sm:$0xff] }
  0xf3   : > { %v365_v34 = vld [vmem:[%s1542_s30 + $0x718] sm:$0xff]  ;;  %1125 = vst [vmem:[%s1557_s17 + $0x6d8] sm:$0xff] %v869_v26  ;;  %1126 = vst [vmem:[%s1557_s17 + $0x6e0] sm:$0xff] %v870_v27  ;;  %v619_v35 = vmax.f32 %v363_v32, 0.0  ;;  %v620_v36 = vmax.f32 %v364_v33, 0.0  ;;  %v366_v38 = vld [vmem:[%s1542_s30 + $0x720] sm:$0xff] }
  0xf4   : > { %1127 = vst [vmem:[%s1557_s17 + $0x6e8] sm:$0xff] %v871_v28  ;;  %v621_v37 = vmax.f32 %v365_v34, 0.0  ;;  %v367_v39 = vld [vmem:[%s1542_s30 + $0x728] sm:$0xff]  ;;  %v368_v40 = vld [vmem:[%s1542_s30 + $0x730] sm:$0xff]  ;;  %v872_v41 = vmul.f32 0.1, %v616_v29 }
  0xf5   : > { %v873_v42 = vmul.f32 0.1, %v617_v30  ;;  %v874_v43 = vmul.f32 0.1, %v618_v31  ;;  %v875_v44 = vmul.f32 0.1, %v619_v35 }
  0xf6   : > { %v876_v45 = vmul.f32 0.1, %v620_v36  ;;  %v877_v46 = vmul.f32 0.1, %v621_v37  ;;  %1128 = vst [vmem:[%s1557_s17 + $0x6f0] sm:$0xff] %v872_v41  ;;  %v622_v47 = vmax.f32 %v366_v38, 0.0 }
  0xf7   : > { %1129 = vst [vmem:[%s1557_s17 + $0x6f8] sm:$0xff] %v873_v42  ;;  %1130 = vst [vmem:[%s1557_s17 + $0x700] sm:$0xff] %v874_v43  ;;  %v623_v48 = vmax.f32 %v367_v39, 0.0  ;;  %v624_v49 = vmax.f32 %v368_v40, 0.0  ;;  %v369_v50 = vld [vmem:[%s1542_s30 + $0x738] sm:$0xff]  ;;  %v370_v51 = vld [vmem:[%s1542_s30 + $0x740] sm:$0xff] }
  0xf8   : > { %v371_v52 = vld [vmem:[%s1542_s30 + $0x748] sm:$0xff]  ;;  %1131 = vst [vmem:[%s1557_s17 + $0x708] sm:$0xff] %v875_v44  ;;  %1132 = vst [vmem:[%s1557_s17 + $0x710] sm:$0xff] %v876_v45  ;;  %v625_v53 = vmax.f32 %v369_v50, 0.0  ;;  %v626_v54 = vmax.f32 %v370_v51, 0.0  ;;  %v372_v56 = vld [vmem:[%s1542_s30 + $0x750] sm:$0xff] }
  0xf9   : > { %1133 = vst [vmem:[%s1557_s17 + $0x718] sm:$0xff] %v877_v46  ;;  %v627_v55 = vmax.f32 %v371_v52, 0.0  ;;  %v373_v57 = vld [vmem:[%s1542_s30 + $0x758] sm:$0xff]  ;;  %v374_v58 = vld [vmem:[%s1542_s30 + $0x760] sm:$0xff]  ;;  %v878_v59 = vmul.f32 0.1, %v622_v47 }
  0xfa   : > { %v879_v60 = vmul.f32 0.1, %v623_v48  ;;  %v880_v61 = vmul.f32 0.1, %v624_v49  ;;  %v881_v62 = vmul.f32 0.1, %v625_v53 }
  0xfb   : > { %v882_v63 = vmul.f32 0.1, %v626_v54  ;;  %v883_v0 = vmul.f32 0.1, %v627_v55  ;;  %1134 = vst [vmem:[%s1557_s17 + $0x720] sm:$0xff] %v878_v59  ;;  %v628_v1 = vmax.f32 %v372_v56, 0.0 }
  0xfc   : > { %1135 = vst [vmem:[%s1557_s17 + $0x728] sm:$0xff] %v879_v60  ;;  %1136 = vst [vmem:[%s1557_s17 + $0x730] sm:$0xff] %v880_v61  ;;  %v629_v2 = vmax.f32 %v373_v57, 0.0  ;;  %v630_v3 = vmax.f32 %v374_v58, 0.0  ;;  %v375_v4 = vld [vmem:[%s1542_s30 + $0x768] sm:$0xff]  ;;  %v376_v5 = vld [vmem:[%s1542_s30 + $0x770] sm:$0xff] }
  0xfd   : > { %v377_v6 = vld [vmem:[%s1542_s30 + $0x778] sm:$0xff]  ;;  %1137 = vst [vmem:[%s1557_s17 + $0x738] sm:$0xff] %v881_v62  ;;  %1138 = vst [vmem:[%s1557_s17 + $0x740] sm:$0xff] %v882_v63  ;;  %v631_v7 = vmax.f32 %v375_v4, 0.0  ;;  %v632_v8 = vmax.f32 %v376_v5, 0.0  ;;  %v378_v10 = vld [vmem:[%s1542_s30 + $0x780] sm:$0xff] }
  0xfe   : > { %1139 = vst [vmem:[%s1557_s17 + $0x748] sm:$0xff] %v883_v0  ;;  %v633_v9 = vmax.f32 %v377_v6, 0.0  ;;  %v379_v11 = vld [vmem:[%s1542_s30 + $0x788] sm:$0xff]  ;;  %v380_v12 = vld [vmem:[%s1542_s30 + $0x790] sm:$0xff]  ;;  %v884_v13 = vmul.f32 0.1, %v628_v1 }
  0xff   : > { %v885_v14 = vmul.f32 0.1, %v629_v2  ;;  %v886_v15 = vmul.f32 0.1, %v630_v3  ;;  %v887_v16 = vmul.f32 0.1, %v631_v7 }
 0x100   : > { %v888_v17 = vmul.f32 0.1, %v632_v8  ;;  %v889_v18 = vmul.f32 0.1, %v633_v9  ;;  %1140 = vst [vmem:[%s1557_s17 + $0x750] sm:$0xff] %v884_v13  ;;  %v634_v19 = vmax.f32 %v378_v10, 0.0 }
 0x101   : > { %1141 = vst [vmem:[%s1557_s17 + $0x758] sm:$0xff] %v885_v14  ;;  %1142 = vst [vmem:[%s1557_s17 + $0x760] sm:$0xff] %v886_v15  ;;  %v635_v20 = vmax.f32 %v379_v11, 0.0  ;;  %v636_v21 = vmax.f32 %v380_v12, 0.0  ;;  %v381_v22 = vld [vmem:[%s1542_s30 + $0x798] sm:$0xff]  ;;  %v382_v23 = vld [vmem:[%s1542_s30 + $0x7a0] sm:$0xff] }
 0x102   : > { %v383_v24 = vld [vmem:[%s1542_s30 + $0x7a8] sm:$0xff]  ;;  %1143 = vst [vmem:[%s1557_s17 + $0x768] sm:$0xff] %v887_v16  ;;  %1144 = vst [vmem:[%s1557_s17 + $0x770] sm:$0xff] %v888_v17  ;;  %v637_v25 = vmax.f32 %v381_v22, 0.0  ;;  %v638_v26 = vmax.f32 %v382_v23, 0.0  ;;  %v384_v28 = vld [vmem:[%s1542_s30 + $0x7b0] sm:$0xff] }
 0x103   : > { %1145 = vst [vmem:[%s1557_s17 + $0x778] sm:$0xff] %v889_v18  ;;  %v639_v27 = vmax.f32 %v383_v24, 0.0  ;;  %v385_v29 = vld [vmem:[%s1542_s30 + $0x7b8] sm:$0xff]  ;;  %v386_v30 = vld [vmem:[%s1542_s30 + $0x7c0] sm:$0xff]  ;;  %v890_v31 = vmul.f32 0.1, %v634_v19 }
 0x104   : > { %v891_v32 = vmul.f32 0.1, %v635_v20  ;;  %v892_v33 = vmul.f32 0.1, %v636_v21  ;;  %v893_v34 = vmul.f32 0.1, %v637_v25 }
 0x105   : > { %v894_v35 = vmul.f32 0.1, %v638_v26  ;;  %v895_v36 = vmul.f32 0.1, %v639_v27  ;;  %1146 = vst [vmem:[%s1557_s17 + $0x780] sm:$0xff] %v890_v31  ;;  %v640_v37 = vmax.f32 %v384_v28, 0.0 }
 0x106   : > { %1147 = vst [vmem:[%s1557_s17 + $0x788] sm:$0xff] %v891_v32  ;;  %1148 = vst [vmem:[%s1557_s17 + $0x790] sm:$0xff] %v892_v33  ;;  %v641_v38 = vmax.f32 %v385_v29, 0.0  ;;  %v642_v39 = vmax.f32 %v386_v30, 0.0  ;;  %v387_v40 = vld [vmem:[%s1542_s30 + $0x7c8] sm:$0xff]  ;;  %v388_v41 = vld [vmem:[%s1542_s30 + $0x7d0] sm:$0xff] }
 0x107   : > { %v389_v42 = vld [vmem:[%s1542_s30 + $0x7d8] sm:$0xff]  ;;  %1149 = vst [vmem:[%s1557_s17 + $0x798] sm:$0xff] %v893_v34  ;;  %1150 = vst [vmem:[%s1557_s17 + $0x7a0] sm:$0xff] %v894_v35  ;;  %v643_v43 = vmax.f32 %v387_v40, 0.0  ;;  %v644_v44 = vmax.f32 %v388_v41, 0.0  ;;  %v390_v46 = vld [vmem:[%s1542_s30 + $0x7e0] sm:$0xff] }
 0x108   : > { %1151 = vst [vmem:[%s1557_s17 + $0x7a8] sm:$0xff] %v895_v36  ;;  %v645_v45 = vmax.f32 %v389_v42, 0.0  ;;  %v391_v47 = vld [vmem:[%s1542_s30 + $0x7e8] sm:$0xff]  ;;  %v392_v48 = vld [vmem:[%s1542_s30 + $0x7f0] sm:$0xff]  ;;  %v896_v49 = vmul.f32 0.1, %v640_v37 }
 0x109   : > { %v897_v50 = vmul.f32 0.1, %v641_v38  ;;  %v898_v51 = vmul.f32 0.1, %v642_v39  ;;  %v899_v52 = vmul.f32 0.1, %v643_v43 }
 0x10a   : > { %v900_v53 = vmul.f32 0.1, %v644_v44  ;;  %v901_v54 = vmul.f32 0.1, %v645_v45  ;;  %1152 = vst [vmem:[%s1557_s17 + $0x7b0] sm:$0xff] %v896_v49  ;;  %v646_v55 = vmax.f32 %v390_v46, 0.0 }
 0x10b   : > { %1153 = vst [vmem:[%s1557_s17 + $0x7b8] sm:$0xff] %v897_v50  ;;  %1154 = vst [vmem:[%s1557_s17 + $0x7c0] sm:$0xff] %v898_v51  ;;  %v647_v56 = vmax.f32 %v391_v47, 0.0  ;;  %v648_v57 = vmax.f32 %v392_v48, 0.0  ;;  %v393_v58 = vld [vmem:[%s1542_s30 + $0x7f8] sm:$0xff]  ;;  %s1421_s4 = smov [#allocation5]  }
 0x10c   : > { %1155 = vst [vmem:[%s1557_s17 + $0x7c8] sm:$0xff] %v899_v52  ;;  %1156 = vst [vmem:[%s1557_s17 + $0x7d0] sm:$0xff] %v900_v53  ;;  %v649_v59 = vmax.f32 %v393_v58, 0.0  ;;  %v902_v60 = vmul.f32 0.1, %v646_v55  ;;  %s1354_s5 = sshll.u32 %s1421_s4, 4  ;;  %s1355_s5 = int_to_ptr.vmem [resolvable:$false] %s1354_s5 }
 0x10d   : > { %1157 = vst [vmem:[%s1557_s17 + $0x7d8] sm:$0xff] %v901_v54  ;;  %v903_v61 = vmul.f32 0.1, %v647_v56  ;;  %v904_v62 = vmul.f32 0.1, %v648_v57  ;;  %s1356_s11 = scalar_lea.vmem %s1355_s5, 65536  ;;  %p1357_p8 = scmp.lt.s32.totalorder %s2065_s27, %s1355_s5 }
 0x10e   : > { %v905_v63 = vmul.f32 0.1, %v649_v59  ;;  %1158 = vst [vmem:[%s1557_s17 + $0x7e0] sm:$0xff] %v902_v60  ;;  %p1358_p10 = scmp.lt.s32.totalorder %s1356_s11, %s1350_s3 }
 0x10f   : > { %1159 = vst [vmem:[%s1557_s17 + $0x7e8] sm:$0xff] %v903_v61  ;;  %1160 = vst [vmem:[%s1557_s17 + $0x7f0] sm:$0xff] %v904_v62 }
 0x110   : > { %1161 = vst [vmem:[%s1557_s17 + $0x7f8] sm:$0xff] %v905_v63  ;;  %p1359_p0 = por %p1358_p10, %p1357_p8 }
 0x112   : > { %p1360_p2 = pnand %p1359_p0, %p1353_p13 }
 0x114   : > { %1363 = shalt.err (!%p1360_p2)
}
 0x115   : > { %s1364_s13 = scalar_lea.hbm %s2063_s2, 32768  ;;  %s1368_s20 = scalar_lea.hbm %s2114_s1, 65536 }
 0x116   : > { %p1365_p4 = scmp.ne.s32.totalorder %s2063_s2, %s1364_s13  ;;  %p1369_p9 = scmp.lt.u32.totalorder %s2063_s2, %s2114_s1 }
 0x117   : > { %p1370_p1 = scmp.lt.u32.totalorder %s1368_s20, %s1364_s13  ;;  %p1372_p6 = scmp.lt.u32.totalorder %s1364_s13, %s2063_s2 }
 0x118   : > { %p1366_p5 = pnand %p1365_p4, %p2121_p11 }
 0x119   : > { %p1371_p3 = por %p1370_p1, %p1369_p9 }
 0x11a   : > { %p1367_p7 = pneg %p1366_p5 }
 0x11b   : > { %p1373_p12 = por %p1372_p6, %p1371_p3 }
 0x11d   : > { %p1374_p13 = pnand %p1373_p12, %p1367_p7 }
 0x11f   : > { %1377 = shalt.err (!%p1374_p13)
}
 0x120   : > { %s1422_s24 = smov 4096   ;;  %s1423_s26 = smov 256  }
 0x121   : > { %1272 = dma.vmem_to_hbm [thread:$0]  (%p2121_p11), %s2065_s27, 32768, %s2063_s2, %s1163_s10, %s1422_s24, %s1422_s24, %s1423_s26  }
 0x122 PF: > { %s1192_s30 = sand.u32 1, %s1404_s6   ;;  %p2122_p8 = scmp.ne.s32.totalorder %s2119_s19, 0 }
 0x123   : > { %p2123_p10 = scmp.ge.s32.totalorder %s1416_s9, 2  ;;  %s1193_s17 = scalar_lea.sflag [#allocation4], %s1192_s30 }
 0x125   : > { %p1279_p0 = pnand %p2123_p10, %p2122_p8 }
 0x127   : > { %1399 = dma.done.wait (!%p1279_p0), %s1193_s17, 32768  }
 0x128   : > { %1401 = vsyncadd (!%p1279_p0), %s1193_s17, 4294934528  ;;  %p14_p2 = scmp.ge.s32.totalorder %s1459_s12, 4   ;;  %s2124_s6 = smov %s1408_s7 }
 0x129   : > { %s2125_s7 = smov %s1412_s8  ;;  %s2126_s8 = smov %s1471_s15 }
 0x12a   : > { %s2127_s9 = smov %s1459_s12  ;;  %16 = sbr.rel (!%p14_p2) target bundleno = 5 (0x5), region = 69 }
 0x131   :  { %1198 = vsyncpa [#allocation3], 1 }
 0x132   :  { %1200 = vsyncpa [#allocation3 + $0x1], 1 }
 0x133   :  { %1201 = vsyncpa [#allocation4], 1 }
 0x134   :  { %1203 = vsyncpa [#allocation4 + $0x1], 1 }

</bundles_post_ra>
